<compile_context>
chip_gen: v7x
topology: tpu7x:2x2x1
jax: 0.10.0
libtpu: 0.0.40
codegen_flags: <defaults>
</compile_context>

<pallas_src>
import functools

import jax
import jax.numpy as jnp
from jax.experimental import pallas as pl
from jax.experimental.pallas import tpu as pltpu

PAD_IDX = 0
EOS_IDX = 2

_NEG_BIG = -1e30  # finite "-inf" so padded vocab columns never produce NaN


def _round_up(x, m):
    return (x + m - 1) // m * m


def _chip_vmem_bytes():
    try:
        info = pltpu.get_tpu_info()
        for attr in ("vmem_capacity_bytes", "vmem_bytes", "vmem_size_bytes"):
            v = getattr(info, attr, None)
            if v:
                return int(v)
    except Exception:
        pass
    return 64 * 1024 * 1024  # conservative (v7x-sized) fallback


_VMEM_CAP = _chip_vmem_bytes()
if _VMEM_CAP >= 96 * 1024 * 1024:          # v5e / v6e: 128 MiB physical VMEM
    _DEC_VMEM_LIMIT = 96 * 1024 * 1024
    _TM_TARGET = 1024
else:                                       # v7x: 64 MiB physical VMEM
    _DEC_VMEM_LIMIT = 48 * 1024 * 1024
    _TM_TARGET = 512
_TV_TARGET = 2048
_ENC_BLOCK_BUDGET = min(_DEC_VMEM_LIMIT // 4, 16 * 1024 * 1024)


def _vocab_tiles(vocab):
    """Vocab tile + padded vocab (shared by prepare_params and decoder_nll)."""
    if vocab <= _TV_TARGET:
        return vocab, vocab                 # full-extent block, no padding
    return _TV_TARGET, _round_up(vocab, _TV_TARGET)


def _row_tiles(m):
    """Row tile + padded rows; guarantees >=2 m tiles when M allows (megacore)."""
    tm = min(_TM_TARGET, _round_up(m, 8))
    if m > 8 and _round_up(m, tm) == tm:    # would be a single m tile -> split
        tm = _round_up(-(-m // 2), 8)
    return tm, _round_up(m, tm)


def _encoder_tiles(batch, seq, emb):
    if batch <= 8:
        tb, bp = batch, batch
    else:
        tb, bp = 8, _round_up(batch, 8)
    # 2 branches x 2 pipeline buffers x (tb*ts*E*2 bytes) <= block budget
    ts = _ENC_BLOCK_BUDGET // (8 * tb * max(emb, 1))
    ts = min(max((ts // 128) * 128, 128), 2048)
    if seq <= ts:
        return tb, bp, seq, seq             # single seq tile, full extent
    return tb, bp, ts, _round_up(seq, ts)


# --------------- gridded encoder + fixed-VQ kernel (pooled-sum acc) ---------------

def _encoder_vq_kernel(emb_t_ref, emb_p_ref, mask_ref,
                       wt_ref, bt_ref, wp_ref, bp_ref, cbt_ref, cbp_ref,
                       zt_ref, zp_ref, qt_ref, qp_ref, idxt_ref, idxp_ref,
                       sum_t, sum_p, cnt):
    # emb_*: (TB, TS, E) bf16, mask: (TB, TS) f32, w_*: (E, D) bf16,
    # b_*: (1, D) f32, cb_*: (K, D) f32; outputs (TB, D) f32 / (TB, 128) i32.
    s = pl.program_id(1)
    ns = pl.num_programs(1)

    @pl.when(s == 0)
    def _():
        sum_t[...] = jnp.zeros_like(sum_t)
        sum_p[...] = jnp.zeros_like(sum_p)
        cnt[...] = jnp.zeros_like(cnt)

    mask = mask_ref[...]                                              # (TB, TS)
    cnt[...] += jnp.sum(mask, axis=1, keepdims=True)
    mb = mask.astype(jnp.bfloat16)[:, :, None]                        # bf16 on VPU
    sum_t[...] += jnp.sum((emb_t_ref[...] * mb).astype(jnp.float32), axis=1)
    sum_p[...] += jnp.sum((emb_p_ref[...] * mb).astype(jnp.float32), axis=1)

    @pl.when(s == ns - 1)
    def _():
        inv_cnt = 1.0 / jnp.maximum(cnt[...], 1.0)                    # (TB, 1)

        # TODO(synk): the two projections could share one MXU push only via a
        # block-diagonal weight (different pooled inputs); left as two tiny dots.
        def branch(pooled_sum, w_ref, b_ref, cb_ref, z_ref, q_ref, idx_ref):
            pooled = pooled_sum * inv_cnt                             # (TB, E) f32
            proj = jnp.dot(pooled.astype(jnp.bfloat16), w_ref[...],
                           preferred_element_type=jnp.float32)
            z = jnp.tanh(proj + b_ref[...])                           # (TB, D)
            z_ref[...] = z

            cb = cb_ref[...]                                          # (K, D)
            z2 = jnp.sum(z * z, axis=1, keepdims=True)                # (TB, 1)
            c2 = jnp.sum(cb * cb, axis=1)[None, :]                    # (1, K)
            cross = jax.lax.dot_general(z, cb, (((1,), (1,)), ((), ())),
                                        preferred_element_type=jnp.float32)
            dist = z2 - 2.0 * cross + c2                              # (TB, K)
            k = dist.shape[1]
            min_d = jnp.min(dist, axis=1, keepdims=True)
            iota = jax.lax.broadcasted_iota(jnp.int32, dist.shape, 1)
            idx = jnp.min(jnp.where(dist <= min_d, iota, k), axis=1)
            idx = jnp.minimum(idx, k - 1)                             # NaN-safe clamp
            idx_ref[...] = jnp.broadcast_to(idx[:, None],
                                            idx_ref.shape).astype(jnp.int32)
            onehot = (iota == idx[:, None]).astype(jnp.float32)       # (TB, K)
            q_ref[...] = jnp.dot(onehot, cb, preferred_element_type=jnp.float32)

        branch(sum_t[...], wt_ref, bt_ref, cbt_ref, zt_ref, qt_ref, idxt_ref)
        branch(sum_p[...], wp_ref, bp_ref, cbp_ref, zp_ref, qp_ref, idxp_ref)


def encode_and_quantize(tab_t, tab_p, src, wt, bt, wp, bp, cb_t, cb_p):
    B, S = src.shape
    E = tab_t.shape[1]
    Dt, Dp = wt.shape[1], wp.shape[1]
    K = cb_t.shape[0]
    TB, Bp, TS, Sp = _encoder_tiles(B, S, E)

    src_p = src
    if Bp != B or Sp != S:
        src_p = jnp.pad(src, ((0, Bp - B), (0, Sp - S)), constant_values=PAD_IDX)
    # TODO(synk): in-kernel gather (memory_space=pl.ANY + scalar-prefetched ids)
    # would avoid materializing the gathered (Bp,Sp,E) embeddings in HBM.
    emb_t = tab_t[src_p]                                              # (Bp, Sp, E) bf16
    emb_p = tab_p[src_p]
    mask = (src_p != PAD_IDX).astype(jnp.float32)                     # (Bp, Sp)

    grid = (Bp // TB, Sp // TS)
    full = lambda shape: pl.BlockSpec(shape, lambda b, s: (0, 0))
    out_shape = (jax.ShapeDtypeStruct((Bp, Dt), jnp.float32),
                 jax.ShapeDtypeStruct((Bp, Dp), jnp.float32),
                 jax.ShapeDtypeStruct((Bp, Dt), jnp.float32),
                 jax.ShapeDtypeStruct((Bp, Dp), jnp.float32),
                 jax.ShapeDtypeStruct((Bp, 128), jnp.int32),
                 jax.ShapeDtypeStruct((Bp, 128), jnp.int32))

    z_t, z_p, q_t, q_p, idx_t, idx_p = pl.pallas_call(
        _encoder_vq_kernel,
        out_shape=out_shape,
        grid_spec=pltpu.PrefetchScalarGridSpec(
            num_scalar_prefetch=0,
            grid=grid,
            in_specs=[pl.BlockSpec((TB, TS, E), lambda b, s: (b, s, 0)),
                      pl.BlockSpec((TB, TS, E), lambda b, s: (b, s, 0)),
                      pl.BlockSpec((TB, TS), lambda b, s: (b, s)),
                      full((E, Dt)), full((1, Dt)),
                      full((E, Dp)), full((1, Dp)),
                      full((K, Dt)), full((K, Dp))],
            out_specs=(pl.BlockSpec((TB, Dt), lambda b, s: (b, 0)),
                       pl.BlockSpec((TB, Dp), lambda b, s: (b, 0)),
                       pl.BlockSpec((TB, Dt), lambda b, s: (b, 0)),
                       pl.BlockSpec((TB, Dp), lambda b, s: (b, 0)),
                       pl.BlockSpec((TB, 128), lambda b, s: (b, 0)),
                       pl.BlockSpec((TB, 128), lambda b, s: (b, 0))),
            scratch_shapes=[pltpu.VMEM((TB, E), jnp.float32),
                            pltpu.VMEM((TB, E), jnp.float32),
                            pltpu.VMEM((TB, 1), jnp.float32)]),
        compiler_params=pltpu.CompilerParams(
            dimension_semantics=("parallel", "arbitrary"),
            vmem_limit_bytes=_DEC_VMEM_LIMIT),
    )(emb_t, emb_p, mask, wt, bt, wp, bp, cb_t, cb_p)

    if Bp != B:
        z_t, z_p, q_t, q_p = z_t[:B], z_p[:B], q_t[:B], q_p[:B]
        idx_t, idx_p = idx_t[:B], idx_p[:B]
    return z_t, z_p, q_t, q_p, idx_t[:, 0], idx_p[:, 0]


# --------- gridded decoder: fused (emb+mem) -> bf16 logits + LSE + NLL ---------

def _decoder_main_kernel(emb_ref, mem_ref, bidx_ref, w_ref, b_ref, gold_ref,
                         logits_ref, lse_ref, gold_lp_ref,
                         x_scr, m_scr, l_scr, g_scr):
    # emb: (TM, E) bf16, mem: (Bp, E) bf16, bidx/gold: (TM, 1) i32,
    # w: (E, TV) bf16, b: (1, TV) f32; logits: (TM, TV) bf16,
    # lse/gold_lp: (TM, 128) f32 (lane-dense, col 0 used).
    v = pl.program_id(1)
    nv = pl.num_programs(1)

    @pl.when(v == 0)
    def _():
        m_scr[...] = jnp.full_like(m_scr, _NEG_BIG)
        l_scr[...] = jnp.zeros_like(l_scr)
        g_scr[...] = jnp.zeros_like(g_scr)
        # Build the x tile once per m tile: dec_emb + per-row memory summary
        # (row -> batch expansion done with a tiny one-hot @ mem MXU matmul).
        tm, bp = x_scr.shape[0], mem_ref.shape[0]
        onehot = (bidx_ref[...] ==
                  jax.lax.broadcasted_iota(jnp.int32, (tm, bp), 1)
                  ).astype(jnp.bfloat16)                              # (TM, Bp)
        mem_rows = jnp.dot(onehot, mem_ref[...],
                           preferred_element_type=jnp.float32)        # (TM, E)
        x_scr[...] = (emb_ref[...].astype(jnp.float32)
                      + mem_rows).astype(jnp.bfloat16)

    logits = jnp.dot(x_scr[...], w_ref[...],
                     preferred_element_type=jnp.float32) + b_ref[...]
    logits_ref[...] = logits.astype(logits_ref.dtype)                 # bf16 write

    # online log-sum-exp over the streamed vocab axis
    row_max = jnp.max(logits, axis=1, keepdims=True)                  # (TM, 1)
    m_prev = m_scr[...]
    m_new = jnp.maximum(m_prev, row_max)
    alpha = jnp.exp(m_prev - m_new)
    l_scr[...] = alpha * l_scr[...] + jnp.sum(jnp.exp(logits - m_new),
                                              axis=1, keepdims=True)
    m_scr[...] = m_new

    # gold-token logit gather (global column id = v * TV + lane)
    col = v * logits.shape[1] + jax.lax.broadcasted_iota(
        jnp.int32, logits.shape, 1)
    hit = col == gold_ref[...]                                        # (TM, TV)
    g_scr[...] += jnp.sum(jnp.where(hit, logits, 0.0), axis=1, keepdims=True)

    @pl.when(v == nv - 1)
    def _():
        lse = m_scr[...] + jnp.log(l_scr[...])                        # (TM, 1)
        lse_ref[...] = jnp.broadcast_to(lse, lse_ref.shape)
        gold_lp_ref[...] = jnp.broadcast_to(g_scr[...] - lse, gold_lp_ref.shape)


def _normalize_kernel(logits_ref, lse_ref, out_ref):
    # logprobs = logits - lse, rewritten in place (bf16 in, bf16 out, aliased).
    out_ref[...] = (logits_ref[...].astype(jnp.float32)
                    - lse_ref[:, 0:1]).astype(out_ref.dtype)


def decoder_nll(emb_table, dec_in, gold, mem_summary, w_pad, b_pad, vocab):
    """emb_table: (V, E) bf16; dec_in/gold: (B, T) i32; mem_summary: (B, E) f32;
    w_pad: (E, Vp) bf16; b_pad: (1, Vp) f32 (-1e30 in pad cols).
    Returns (logprobs (B,T,V) bf16, masked NLL loss scalar f32)."""
    B, T = dec_in.shape
    E = emb_table.shape[1]
    M = B * T
    TM, Mp = _row_tiles(M)
    TV, Vp = _vocab_tiles(vocab)

    # Pad the tiny index arrays (not the big gathered tensors) so the gather
    # itself produces the padded (Mp, E) layout with no extra HBM pass.
    dec_ids = jnp.pad(dec_in.reshape(M).astype(jnp.int32), (0, Mp - M),
                      constant_values=PAD_IDX)
    dec_emb = emb_table[dec_ids]                                      # (Mp, E) bf16
    gold_pad = jnp.pad(gold.reshape(M).astype(jnp.int32), (0, Mp - M),
                       constant_values=PAD_IDX)[:, None]              # (Mp, 1)
    rows = jnp.arange(Mp, dtype=jnp.int32)
    row_batch = jnp.minimum(rows // T, B - 1)[:, None]                # (Mp, 1)

    Bp = _round_up(B, 8)
    mem = jnp.pad(mem_summary, ((0, Bp - B), (0, 0))).astype(jnp.bfloat16)

    grid = (Mp // TM, Vp // TV)
    if Vp // TV >= 3:
        w_spec = pl.BlockSpec((E, TV), lambda m, v: (0, v),
                              pipeline_mode=pl.Buffered(3))
    else:
        w_spec = pl.BlockSpec((E, TV), lambda m, v: (0, v))

    logits, lse, gold_lp = pl.pallas_call(
        _decoder_main_kernel,
        out_shape=(jax.ShapeDtypeStruct((Mp, Vp), jnp.bfloat16),
                   jax.ShapeDtypeStruct((Mp, 128), jnp.float32),
                   jax.ShapeDtypeStruct((Mp, 128), jnp.float32)),
        grid_spec=pltpu.PrefetchScalarGridSpec(
            num_scalar_prefetch=0,
            grid=grid,
            in_specs=[pl.BlockSpec((TM, E), lambda m, v: (m, 0)),
                      pl.BlockSpec((Bp, E), lambda m, v: (0, 0)),
                      pl.BlockSpec((TM, 1), lambda m, v: (m, 0)),
                      w_spec,
                      pl.BlockSpec((1, TV), lambda m, v: (0, v)),
                      pl.BlockSpec((TM, 1), lambda m, v: (m, 0))],
            out_specs=(pl.BlockSpec((TM, TV), lambda m, v: (m, v)),
                       pl.BlockSpec((TM, 128), lambda m, v: (m, 0)),
                       pl.BlockSpec((TM, 128), lambda m, v: (m, 0))),
            scratch_shapes=[pltpu.VMEM((TM, E), jnp.bfloat16),
                            pltpu.VMEM((TM, 1), jnp.float32),
                            pltpu.VMEM((TM, 1), jnp.float32),
                            pltpu.VMEM((TM, 1), jnp.float32)]),
        compiler_params=pltpu.CompilerParams(
            dimension_semantics=("parallel", "arbitrary"),
            vmem_limit_bytes=_DEC_VMEM_LIMIT),
    )(dec_emb, mem, row_batch, w_pad, b_pad, gold_pad)

    # In-place bf16 normalization sweep (no wrapper pass over the big tensor).
    logprobs = pl.pallas_call(
        _normalize_kernel,
        out_shape=jax.ShapeDtypeStruct((Mp, Vp), jnp.bfloat16),
        grid_spec=pltpu.PrefetchScalarGridSpec(
            num_scalar_prefetch=0,
            grid=grid,
            in_specs=[pl.BlockSpec((TM, TV), lambda m, v: (m, v)),
                      pl.BlockSpec((TM, 128), lambda m, v: (m, 0))],
            out_specs=pl.BlockSpec((TM, TV), lambda m, v: (m, v))),
        compiler_params=pltpu.CompilerParams(
            dimension_semantics=("parallel", "parallel"),
            vmem_limit_bytes=_DEC_VMEM_LIMIT),
        input_output_aliases={0: 0},
    )(logits, lse)

    if Mp != M or Vp != vocab:
        logprobs = logprobs[:M, :vocab]
    logprobs = logprobs.reshape(B, T, vocab)

    gold_lp_row = gold_lp[:M, 0].reshape(B, T)
    tok_mask = (gold != PAD_IDX).astype(jnp.float32)
    loss = -jnp.sum(gold_lp_row * tok_mask) / jnp.maximum(jnp.sum(tok_mask), 1.0)
    return logprobs, loss


# ------------------------------ glue / model ------------------------------

def input_from_batch(inputs, eos_idx, pad_idx):
    sent = inputs                                        # (B, S) int32
    enc_in = jnp.where(sent == eos_idx, pad_idx, sent)
    dec_out_gold = sent[:, 1:]
    dec_in = jnp.where(sent[:, :-1] == eos_idx, pad_idx, sent[:, :-1])
    return {'batch_size': sent.shape[0], 'dec_in': dec_in,
            'dec_out_gold': dec_out_gold, 'enc_in': enc_in, 'sent': sent}


def init_params(key, vocab, emb_size, distil_size, disper_size, disper_num):
    ks = jax.random.split(key, 8)
    s = 0.1
    return {
        'emb_table':   s * jax.random.normal(ks[0], (vocab, emb_size), jnp.float32),
        'emb_table_p': s * jax.random.normal(ks[1], (vocab, emb_size), jnp.float32),
        'enc_t_w': s * jax.random.normal(ks[2], (emb_size, distil_size), jnp.float32),
        'enc_t_b': jnp.zeros((1, distil_size), jnp.float32),
        'enc_p_w': s * jax.random.normal(ks[3], (emb_size, disper_size), jnp.float32),
        'enc_p_b': jnp.zeros((1, disper_size), jnp.float32),
        'codebook_t': s * jax.random.normal(ks[4], (disper_num, distil_size), jnp.float32),
        'codebook_p': s * jax.random.normal(ks[5], (disper_num, disper_size), jnp.float32),
        'dec_w': s * jax.random.normal(ks[6], (emb_size, vocab), jnp.float32),
        'dec_b': jnp.zeros((1, vocab), jnp.float32),
    }


def prepare_params(raw):
    """Hoist all casts / pads out of the jitted forward (done once)."""
    vocab = raw['dec_w'].shape[1]
    _, vp = _vocab_tiles(vocab)
    dec_w = raw['dec_w'].astype(jnp.bfloat16)
    dec_b = raw['dec_b'].astype(jnp.float32)
    if vp != vocab:
        dec_w = jnp.pad(dec_w, ((0, 0), (0, vp - vocab)))
        dec_b = jnp.pad(dec_b, ((0, 0), (0, vp - vocab)),
                        constant_values=_NEG_BIG)
    return {
        'emb_table':   raw['emb_table'].astype(jnp.bfloat16),
        'emb_table_p': raw['emb_table_p'].astype(jnp.bfloat16),
        'enc_t_w': raw['enc_t_w'].astype(jnp.bfloat16),
        'enc_t_b': raw['enc_t_b'].astype(jnp.float32),
        'enc_p_w': raw['enc_p_w'].astype(jnp.bfloat16),
        'enc_p_b': raw['enc_p_b'].astype(jnp.float32),
        'codebook_t': raw['codebook_t'].astype(jnp.float32),
        'codebook_p': raw['codebook_p'].astype(jnp.float32),
        'dec_w': dec_w,
        'dec_b': dec_b,
    }


@functools.partial(jax.jit, static_argnames=('training',))
def fix_vqvae_forward(params, inputs_batch, training=False):
    inp = input_from_batch(inputs_batch, EOS_IDX, PAD_IDX)
    src = inp['enc_in']                                              # (B, S)
    tab_t = params['emb_table']                                      # bf16
    tab_p = params['emb_table_p']                                    # bf16
    vocab = tab_t.shape[0]

    # gridded encoder + fixed-VQ, both branches, single launch
    z_t, z_p, q_t, q_p, idx_t, idx_p = encode_and_quantize(
        tab_t, tab_p, src,
        params['enc_t_w'], params['enc_t_b'],
        params['enc_p_w'], params['enc_p_b'],
        params['codebook_t'], params['codebook_p'])

    # commitment losses (fixed codebook => stop-gradient on the quantized side)
    loss_vq_t = jnp.mean((jax.lax.stop_gradient(q_t) - z_t) ** 2)
    loss_vq_p = jnp.mean((jax.lax.stop_gradient(q_p) - z_p) ** 2)

    # straight-through estimator: forward value == q, gradient flows to z
    q_t_st = z_t + jax.lax.stop_gradient(q_t - z_t)
    q_p_st = z_p + jax.lax.stop_gradient(q_p - z_p)

    # memory = cat([z_t_quantized, z_p_quantized], dim=1)
    memory = jnp.concatenate([q_t_st[:, None, :], q_p_st[:, None, :]], axis=1)
    mem_summary = jnp.mean(memory, axis=1)                           # (B, D)
    # TODO(synk): mem_summary + dec_emb assumes distil/disper sizes == emb_size
    # (true for the provided config stand-in); real decoder would project.

    dec_in = inp['dec_in']                                           # (B, T)
    gold = inp['dec_out_gold']                                       # (B, T)
    logprobs, loss_reconstruct = decoder_nll(
        tab_t, dec_in, gold, mem_summary,
        params['dec_w'], params['dec_b'], vocab)

    result = {
        'z_t': z_t,
        'z_p': z_p,
        'enc_outdict_t': {'pooled_memory': z_t},
        'quantizer_out_t': {'quantized_stack': q_t_st[:, None, :],
                            'encoding_indices': idx_t, 'loss': loss_vq_t},
        'quantizer_out_p': {'quantized_stack': q_p_st[:, None, :],
                            'encoding_indices': idx_p, 'loss': loss_vq_p},
        'decoder_output': {'logprobs': logprobs,
                           'loss_reconstruct': loss_reconstruct},
    }
    if training:
        # FixVQVAE.calculate_loss with FixedVectorQuantizer for both branches:
        # emb_p hits the `pass` elif (p loss NOT added), emb_t adds its loss.
        result['loss'] = loss_reconstruct + loss_vq_t
    return result


if __name__ == "__main__":
    B, S = 2, 8            # batch, seq
    VOCAB, EMB = 32, 32    # vocab size, emb_size == distil_size == disper_size
    K = 8                  # disper_num (codebook entries)

    key = jax.random.PRNGKey(0)
    pkey, dkey = jax.random.split(key)
    raw_params = init_params(pkey, VOCAB, EMB, EMB, EMB, K)
    params = prepare_params(raw_params)        # casts/pads hoisted out of jit

    # deterministic token batch: ids in [3, VOCAB), with an EOS token inserted
    toks = jax.random.randint(dkey, (B, S), 3, VOCAB, dtype=jnp.int32)
    toks = toks.at[:, -1].set(EOS_IDX)

    out = fix_vqvae_forward(params, toks, training=True)
    jax.block_until_ready(out)

    assert out['z_t'].shape == (B, EMB)
    assert out['quantizer_out_p']['quantized_stack'].shape == (B, 1, EMB)
    assert out['quantizer_out_p']['encoding_indices'].shape == (B,)
    assert out['decoder_output']['logprobs'].shape == (B, S - 1, VOCAB)
    assert bool(jnp.isfinite(out['loss']))
    print("KERNEL_OK")
</pallas_src>

<mosaic_0001>
module attributes {stable_mosaic.version = 11 : i64} {
  func.func @_encoder_vq_kernel(%arg0: i32, %arg1: i32, %arg2: memref<2x8x32xbf16, #tpu.memory_space<vmem>>, %arg3: memref<2x8x32xbf16, #tpu.memory_space<vmem>>, %arg4: memref<2x8xf32, #tpu.memory_space<vmem>>, %arg5: memref<32x32xbf16, #tpu.memory_space<vmem>>, %arg6: memref<1x32xf32, #tpu.memory_space<vmem>>, %arg7: memref<32x32xbf16, #tpu.memory_space<vmem>>, %arg8: memref<1x32xf32, #tpu.memory_space<vmem>>, %arg9: memref<8x32xf32, #tpu.memory_space<vmem>>, %arg10: memref<8x32xf32, #tpu.memory_space<vmem>>, %arg11: memref<2x32xf32, #tpu.memory_space<vmem>>, %arg12: memref<2x32xf32, #tpu.memory_space<vmem>>, %arg13: memref<2x32xf32, #tpu.memory_space<vmem>>, %arg14: memref<2x32xf32, #tpu.memory_space<vmem>>, %arg15: memref<2x128xi32, #tpu.memory_space<vmem>>, %arg16: memref<2x128xi32, #tpu.memory_space<vmem>>, %arg17: memref<2x32xf32, #tpu.memory_space<vmem>>, %arg18: memref<2x32xf32, #tpu.memory_space<vmem>>, %arg19: memref<2x1xf32, #tpu.memory_space<vmem>>) attributes {dimension_semantics = [#tpu.dimension_semantics<parallel>, #tpu.dimension_semantics<arbitrary>], iteration_bounds = array<i64: 1, 1>, scalar_prefetch = 0 : i64, scratch_operands = 3 : i64, tpu.core_type = #tpu.core_type<tc>, window_params = [{transform_indices = @transform_0, window_bounds = array<i64: 2, 8, 32>}, {transform_indices = @transform_1, window_bounds = array<i64: 2, 8, 32>}, {transform_indices = @transform_2, window_bounds = array<i64: 2, 8>}, {pipeline_mode = #tpu.pipeline_mode<synchronous>, transform_indices = @transform_3, window_bounds = array<i64: 32, 32>}, {pipeline_mode = #tpu.pipeline_mode<synchronous>, transform_indices = @transform_4, window_bounds = array<i64: 1, 32>}, {pipeline_mode = #tpu.pipeline_mode<synchronous>, transform_indices = @transform_5, window_bounds = array<i64: 32, 32>}, {pipeline_mode = #tpu.pipeline_mode<synchronous>, transform_indices = @transform_6, window_bounds = array<i64: 1, 32>}, {pipeline_mode = #tpu.pipeline_mode<synchronous>, transform_indices = @transform_7, window_bounds = array<i64: 8, 32>}, {pipeline_mode = #tpu.pipeline_mode<synchronous>, transform_indices = @transform_8, window_bounds = array<i64: 8, 32>}, {transform_indices = @transform_9, window_bounds = array<i64: 2, 32>}, {transform_indices = @transform_10, window_bounds = array<i64: 2, 32>}, {transform_indices = @transform_11, window_bounds = array<i64: 2, 32>}, {transform_indices = @transform_12, window_bounds = array<i64: 2, 32>}, {transform_indices = @transform_13, window_bounds = array<i64: 2, 128>}, {transform_indices = @transform_14, window_bounds = array<i64: 2, 128>}]} {
    %c0_i32 = arith.constant 0 : i32
    %0 = arith.cmpi eq, %arg1, %c0_i32 : i32
    %1 = arith.extui %0 : i1 to i32
    %c0_i32_0 = arith.constant 0 : i32
    %2 = arith.cmpi ne, %1, %c0_i32_0 : i32
    scf.if %2 {
      %cst_24 = arith.constant 0.000000e+00 : f32
      %30 = vector.broadcast %cst_24 : f32 to vector<2x32xf32>
      %c0_25 = arith.constant 0 : index
      %c0_26 = arith.constant 0 : index
      %31 = vector.load %arg17[%c0_25, %c0_26] : memref<2x32xf32, #tpu.memory_space<vmem>>, vector<2x32xf32>
      tpu.vector_store %arg17[%c0_25, %c0_26], %30 {strides = array<i32>} : memref<2x32xf32, #tpu.memory_space<vmem>>, vector<2x32xf32>,
      %cst_27 = arith.constant 0.000000e+00 : f32
      %32 = vector.broadcast %cst_27 : f32 to vector<2x32xf32>
      %c0_28 = arith.constant 0 : index
      %c0_29 = arith.constant 0 : index
      %33 = vector.load %arg18[%c0_28, %c0_29] : memref<2x32xf32, #tpu.memory_space<vmem>>, vector<2x32xf32>
      tpu.vector_store %arg18[%c0_28, %c0_29], %32 {strides = array<i32>} : memref<2x32xf32, #tpu.memory_space<vmem>>, vector<2x32xf32>,
      %cst_30 = arith.constant 0.000000e+00 : f32
      %34 = vector.broadcast %cst_30 : f32 to vector<2x1xf32>
      %c0_31 = arith.constant 0 : index
      %c0_32 = arith.constant 0 : index
      %35 = vector.load %arg19[%c0_31, %c0_32] : memref<2x1xf32, #tpu.memory_space<vmem>>, vector<2x1xf32>
      tpu.vector_store %arg19[%c0_31, %c0_32], %34 {strides = array<i32>} : memref<2x1xf32, #tpu.memory_space<vmem>>, vector<2x1xf32>,
    } else {
    }
    %c0 = arith.constant 0 : index
    %c0_1 = arith.constant 0 : index
    %3 = vector.load %arg4[%c0, %c0_1] : memref<2x8xf32, #tpu.memory_space<vmem>>, vector<2x8xf32>
    %c0_2 = arith.constant 0 : index
    %c0_3 = arith.constant 0 : index
    %4 = vector.load %arg19[%c0_2, %c0_3] : memref<2x1xf32, #tpu.memory_space<vmem>>, vector<2x1xf32>
    %cst = arith.constant dense<0.000000e+00> : vector<2xf32>
    %5 = vector.multi_reduction <add>, %3, %cst [1] : vector<2x8xf32> to vector<2xf32>
    %6 = vector.shape_cast %5 : vector<2xf32> to vector<2x1xf32>
    %7 = arith.addf %4, %6 : vector<2x1xf32>
    %c0_4 = arith.constant 0 : index
    %c0_5 = arith.constant 0 : index
    %8 = vector.load %arg19[%c0_4, %c0_5] : memref<2x1xf32, #tpu.memory_space<vmem>>, vector<2x1xf32>
    tpu.vector_store %arg19[%c0_4, %c0_5], %7 {strides = array<i32>} : memref<2x1xf32, #tpu.memory_space<vmem>>, vector<2x1xf32>,
    %9 = arith.truncf %3 : vector<2x8xf32> to vector<2x8xbf16>
    %10 = vector.shape_cast %9 : vector<2x8xbf16> to vector<2x8x1xbf16>
    %c0_6 = arith.constant 0 : index
    %c0_7 = arith.constant 0 : index
    %11 = vector.load %arg17[%c0_6, %c0_7] : memref<2x32xf32, #tpu.memory_space<vmem>>, vector<2x32xf32>
    %c0_8 = arith.constant 0 : index
    %c0_9 = arith.constant 0 : index
    %c0_10 = arith.constant 0 : index
    %12 = vector.load %arg2[%c0_8, %c0_9, %c0_10] : memref<2x8x32xbf16, #tpu.memory_space<vmem>>, vector<2x8x32xbf16>
    %13 = vector.broadcast %10 : vector<2x8x1xbf16> to vector<2x8x32xbf16>
    %14 = arith.mulf %12, %13 : vector<2x8x32xbf16>
    %15 = arith.extf %14 : vector<2x8x32xbf16> to vector<2x8x32xf32>
    %cst_11 = arith.constant dense<0.000000e+00> : vector<2x32xf32>
    %16 = vector.multi_reduction <add>, %15, %cst_11 [1] : vector<2x8x32xf32> to vector<2x32xf32>
    %17 = arith.addf %11, %16 : vector<2x32xf32>
    %c0_12 = arith.constant 0 : index
    %c0_13 = arith.constant 0 : index
    %18 = vector.load %arg17[%c0_12, %c0_13] : memref<2x32xf32, #tpu.memory_space<vmem>>, vector<2x32xf32>
    tpu.vector_store %arg17[%c0_12, %c0_13], %17 {strides = array<i32>} : memref<2x32xf32, #tpu.memory_space<vmem>>, vector<2x32xf32>,
    %c0_14 = arith.constant 0 : index
    %c0_15 = arith.constant 0 : index
    %19 = vector.load %arg18[%c0_14, %c0_15] : memref<2x32xf32, #tpu.memory_space<vmem>>, vector<2x32xf32>
    %c0_16 = arith.constant 0 : index
    %c0_17 = arith.constant 0 : index
    %c0_18 = arith.constant 0 : index
    %20 = vector.load %arg3[%c0_16, %c0_17, %c0_18] : memref<2x8x32xbf16, #tpu.memory_space<vmem>>, vector<2x8x32xbf16>
    %21 = vector.broadcast %10 : vector<2x8x1xbf16> to vector<2x8x32xbf16>
    %22 = arith.mulf %20, %21 : vector<2x8x32xbf16>
    %23 = arith.extf %22 : vector<2x8x32xbf16> to vector<2x8x32xf32>
    %cst_19 = arith.constant dense<0.000000e+00> : vector<2x32xf32>
    %24 = vector.multi_reduction <add>, %23, %cst_19 [1] : vector<2x8x32xf32> to vector<2x32xf32>
    %25 = arith.addf %19, %24 : vector<2x32xf32>
    %c0_20 = arith.constant 0 : index
    %c0_21 = arith.constant 0 : index
    %26 = vector.load %arg18[%c0_20, %c0_21] : memref<2x32xf32, #tpu.memory_space<vmem>>, vector<2x32xf32>
    tpu.vector_store %arg18[%c0_20, %c0_21], %25 {strides = array<i32>} : memref<2x32xf32, #tpu.memory_space<vmem>>, vector<2x32xf32>,
    %c0_i32_22 = arith.constant 0 : i32
    %27 = arith.cmpi eq, %arg1, %c0_i32_22 : i32
    %28 = arith.extui %27 : i1 to i32
    %c0_i32_23 = arith.constant 0 : i32
    %29 = arith.cmpi ne, %28, %c0_i32_23 : i32
    scf.if %29 {
      %c0_24 = arith.constant 0 : index
      %c0_25 = arith.constant 0 : index
      %30 = vector.load %arg19[%c0_24, %c0_25] : memref<2x1xf32, #tpu.memory_space<vmem>>, vector<2x1xf32>
      %cst_26 = arith.constant 1.000000e+00 : f32
      %31 = vector.broadcast %cst_26 : f32 to vector<2x1xf32>
      %32 = arith.maximumf %30, %31 : vector<2x1xf32>
      %cst_27 = arith.constant 1.000000e+00 : f32
      %33 = vector.broadcast %cst_27 : f32 to vector<2x1xf32>
      %34 = arith.divf %33, %32 : vector<2x1xf32>
      %c0_28 = arith.constant 0 : index
      %c0_29 = arith.constant 0 : index
      %35 = vector.load %arg17[%c0_28, %c0_29] : memref<2x32xf32, #tpu.memory_space<vmem>>, vector<2x32xf32>
      %36 = vector.broadcast %34 : vector<2x1xf32> to vector<2x32xf32>
      %37 = arith.mulf %35, %36 : vector<2x32xf32>
      %38 = arith.truncf %37 : vector<2x32xf32> to vector<2x32xbf16>
      %c0_30 = arith.constant 0 : index
      %c0_31 = arith.constant 0 : index
      %39 = vector.load %arg5[%c0_30, %c0_31] : memref<32x32xbf16, #tpu.memory_space<vmem>>, vector<32x32xbf16>
      %cst_32 = arith.constant dense<0.000000e+00> : vector<2x32xf32>
      %40 = tpu.matmul %38, %39, %cst_32 {dimension_numbers = #tpu.dot_dimension_numbers<[1], [0], [0], [1], [0, 0, 1, 1], [], []>} : vector<2x32xbf16>, vector<32x32xbf16>, vector<2x32xf32> -> vector<2x32xf32>
      %c0_33 = arith.constant 0 : index
      %c0_34 = arith.constant 0 : index
      %41 = vector.load %arg6[%c0_33, %c0_34] : memref<1x32xf32, #tpu.memory_space<vmem>>, vector<1x32xf32>
      %42 = vector.broadcast %41 : vector<1x32xf32> to vector<2x32xf32>
      %43 = arith.addf %40, %42 : vector<2x32xf32>
      %44 = math.tanh %43 : vector<2x32xf32>
      %c0_35 = arith.constant 0 : index
      %c0_36 = arith.constant 0 : index
      %45 = vector.load %arg11[%c0_35, %c0_36] : memref<2x32xf32, #tpu.memory_space<vmem>>, vector<2x32xf32>
      tpu.vector_store %arg11[%c0_35, %c0_36], %44 {strides = array<i32>} : memref<2x32xf32, #tpu.memory_space<vmem>>, vector<2x32xf32>,
      %c0_37 = arith.constant 0 : index
      %c0_38 = arith.constant 0 : index
      %46 = vector.load %arg9[%c0_37, %c0_38] : memref<8x32xf32, #tpu.memory_space<vmem>>, vector<8x32xf32>
      %47 = arith.mulf %44, %44 : vector<2x32xf32>
      %cst_39 = arith.constant dense<0.000000e+00> : vector<2xf32>
      %48 = vector.multi_reduction <add>, %47, %cst_39 [1] : vector<2x32xf32> to vector<2xf32>
      %49 = vector.shape_cast %48 : vector<2xf32> to vector<2x1xf32>
      %50 = arith.mulf %46, %46 : vector<8x32xf32>
      %cst_40 = arith.constant dense<0.000000e+00> : vector<8xf32>
      %51 = vector.multi_reduction <add>, %50, %cst_40 [1] : vector<8x32xf32> to vector<8xf32>
      %52 = vector.shape_cast %51 : vector<8xf32> to vector<1x8xf32>
      %cst_41 = arith.constant dense<0.000000e+00> : vector<2x8xf32>
      %53 = tpu.matmul %44, %46, %cst_41 {dimension_numbers = #tpu.dot_dimension_numbers<[1], [1], [0], [0], [0, 0, 1, 0], [], []>} : vector<2x32xf32>, vector<8x32xf32>, vector<2x8xf32> -> vector<2x8xf32>
      %cst_42 = arith.constant 2.000000e+00 : f32
      %54 = vector.broadcast %cst_42 : f32 to vector<2x8xf32>
      %55 = arith.mulf %54, %53 : vector<2x8xf32>
      %56 = vector.broadcast %49 : vector<2x1xf32> to vector<2x8xf32>
      %57 = arith.subf %56, %55 : vector<2x8xf32>
      %58 = vector.broadcast %52 : vector<1x8xf32> to vector<2x8xf32>
      %59 = arith.addf %57, %58 : vector<2x8xf32>
      %cst_43 = arith.constant dense<0x7F800000> : vector<2xf32>
      %60 = vector.multi_reduction <minimumf>, %59, %cst_43 [1] : vector<2x8xf32> to vector<2xf32>
      %61 = vector.shape_cast %60 : vector<2xf32> to vector<2x1xf32>
      %62 = tpu.iota {dimensions = array<i32: 1>} : vector<2x8xi32>
      %63 = vector.broadcast %61 : vector<2x1xf32> to vector<2x8xf32>
      %64 = arith.cmpf ole, %59, %63 : vector<2x8xf32>
      %c8_i32 = arith.constant 8 : i32
      %65 = vector.broadcast %c8_i32 : i32 to vector<2x8xi32>
      %66 = arith.select %64, %62, %65 : vector<2x8xi1>, vector<2x8xi32>
      %cst_44 = arith.constant dense<2147483647> : vector<2xi32>
      %67 = vector.multi_reduction <minsi>, %66, %cst_44 [1] : vector<2x8xi32> to vector<2xi32>
      %c7_i32 = arith.constant 7 : i32
      %68 = vector.broadcast %c7_i32 : i32 to vector<2xi32>
      %69 = arith.minsi %67, %68 : vector<2xi32>
      %70 = vector.shape_cast %69 : vector<2xi32> to vector<2x1xi32>
      %71 = vector.shape_cast %70 : vector<2x1xi32> to vector<2x1xi32>
      %72 = vector.broadcast %71 : vector<2x1xi32> to vector<2x128xi32>
      %c0_45 = arith.constant 0 : index
      %c0_46 = arith.constant 0 : index
      %73 = vector.load %arg15[%c0_45, %c0_46] : memref<2x128xi32, #tpu.memory_space<vmem>>, vector<2x128xi32>
      tpu.vector_store %arg15[%c0_45, %c0_46], %72 {strides = array<i32>} : memref<2x128xi32, #tpu.memory_space<vmem>>, vector<2x128xi32>,
      %74 = vector.shape_cast %69 : vector<2xi32> to vector<2x1xi32>
      %75 = vector.broadcast %74 : vector<2x1xi32> to vector<2x8xi32>
      %76 = arith.cmpi eq, %62, %75 : vector<2x8xi32>
      %77 = arith.extui %76 : vector<2x8xi1> to vector<2x8xi32>
      %78 = arith.sitofp %77 : vector<2x8xi32> to vector<2x8xf32>
      %cst_47 = arith.constant dense<0.000000e+00> : vector<2x32xf32>
      %79 = tpu.matmul %78, %46, %cst_47 {dimension_numbers = #tpu.dot_dimension_numbers<[1], [0], [0], [1], [0, 0, 1, 1], [], []>} : vector<2x8xf32>, vector<8x32xf32>, vector<2x32xf32> -> vector<2x32xf32>
      %c0_48 = arith.constant 0 : index
      %c0_49 = arith.constant 0 : index
      %80 = vector.load %arg13[%c0_48, %c0_49] : memref<2x32xf32, #tpu.memory_space<vmem>>, vector<2x32xf32>
      tpu.vector_store %arg13[%c0_48, %c0_49], %79 {strides = array<i32>} : memref<2x32xf32, #tpu.memory_space<vmem>>, vector<2x32xf32>,
      %c0_50 = arith.constant 0 : index
      %c0_51 = arith.constant 0 : index
      %81 = vector.load %arg18[%c0_50, %c0_51] : memref<2x32xf32, #tpu.memory_space<vmem>>, vector<2x32xf32>
      %82 = vector.broadcast %34 : vector<2x1xf32> to vector<2x32xf32>
      %83 = arith.mulf %81, %82 : vector<2x32xf32>
      %84 = arith.truncf %83 : vector<2x32xf32> to vector<2x32xbf16>
      %c0_52 = arith.constant 0 : index
      %c0_53 = arith.constant 0 : index
      %85 = vector.load %arg7[%c0_52, %c0_53] : memref<32x32xbf16, #tpu.memory_space<vmem>>, vector<32x32xbf16>
      %cst_54 = arith.constant dense<0.000000e+00> : vector<2x32xf32>
      %86 = tpu.matmul %84, %85, %cst_54 {dimension_numbers = #tpu.dot_dimension_numbers<[1], [0], [0], [1], [0, 0, 1, 1], [], []>} : vector<2x32xbf16>, vector<32x32xbf16>, vector<2x32xf32> -> vector<2x32xf32>
      %c0_55 = arith.constant 0 : index
      %c0_56 = arith.constant 0 : index
      %87 = vector.load %arg8[%c0_55, %c0_56] : memref<1x32xf32, #tpu.memory_space<vmem>>, vector<1x32xf32>
      %88 = vector.broadcast %87 : vector<1x32xf32> to vector<2x32xf32>
      %89 = arith.addf %86, %88 : vector<2x32xf32>
      %90 = math.tanh %89 : vector<2x32xf32>
      %c0_57 = arith.constant 0 : index
      %c0_58 = arith.constant 0 : index
      %91 = vector.load %arg12[%c0_57, %c0_58] : memref<2x32xf32, #tpu.memory_space<vmem>>, vector<2x32xf32>
      tpu.vector_store %arg12[%c0_57, %c0_58], %90 {strides = array<i32>} : memref<2x32xf32, #tpu.memory_space<vmem>>, vector<2x32xf32>,
      %c0_59 = arith.constant 0 : index
      %c0_60 = arith.constant 0 : index
      %92 = vector.load %arg10[%c0_59, %c0_60] : memref<8x32xf32, #tpu.memory_space<vmem>>, vector<8x32xf32>
      %93 = arith.mulf %90, %90 : vector<2x32xf32>
      %cst_61 = arith.constant dense<0.000000e+00> : vector<2xf32>
      %94 = vector.multi_reduction <add>, %93, %cst_61 [1] : vector<2x32xf32> to vector<2xf32>
      %95 = vector.shape_cast %94 : vector<2xf32> to vector<2x1xf32>
      %96 = arith.mulf %92, %92 : vector<8x32xf32>
      %cst_62 = arith.constant dense<0.000000e+00> : vector<8xf32>
      %97 = vector.multi_reduction <add>, %96, %cst_62 [1] : vector<8x32xf32> to vector<8xf32>
      %98 = vector.shape_cast %97 : vector<8xf32> to vector<1x8xf32>
      %cst_63 = arith.constant dense<0.000000e+00> : vector<2x8xf32>
      %99 = tpu.matmul %90, %92, %cst_63 {dimension_numbers = #tpu.dot_dimension_numbers<[1], [1], [0], [0], [0, 0, 1, 0], [], []>} : vector<2x32xf32>, vector<8x32xf32>, vector<2x8xf32> -> vector<2x8xf32>
      %cst_64 = arith.constant 2.000000e+00 : f32
      %100 = vector.broadcast %cst_64 : f32 to vector<2x8xf32>
      %101 = arith.mulf %100, %99 : vector<2x8xf32>
      %102 = vector.broadcast %95 : vector<2x1xf32> to vector<2x8xf32>
      %103 = arith.subf %102, %101 : vector<2x8xf32>
      %104 = vector.broadcast %98 : vector<1x8xf32> to vector<2x8xf32>
      %105 = arith.addf %103, %104 : vector<2x8xf32>
      %cst_65 = arith.constant dense<0x7F800000> : vector<2xf32>
      %106 = vector.multi_reduction <minimumf>, %105, %cst_65 [1] : vector<2x8xf32> to vector<2xf32>
      %107 = vector.shape_cast %106 : vector<2xf32> to vector<2x1xf32>
      %108 = tpu.iota {dimensions = array<i32: 1>} : vector<2x8xi32>
      %109 = vector.broadcast %107 : vector<2x1xf32> to vector<2x8xf32>
      %110 = arith.cmpf ole, %105, %109 : vector<2x8xf32>
      %c8_i32_66 = arith.constant 8 : i32
      %111 = vector.broadcast %c8_i32_66 : i32 to vector<2x8xi32>
      %112 = arith.select %110, %108, %111 : vector<2x8xi1>, vector<2x8xi32>
      %cst_67 = arith.constant dense<2147483647> : vector<2xi32>
      %113 = vector.multi_reduction <minsi>, %112, %cst_67 [1] : vector<2x8xi32> to vector<2xi32>
      %c7_i32_68 = arith.constant 7 : i32
      %114 = vector.broadcast %c7_i32_68 : i32 to vector<2xi32>
      %115 = arith.minsi %113, %114 : vector<2xi32>
      %116 = vector.shape_cast %115 : vector<2xi32> to vector<2x1xi32>
      %117 = vector.shape_cast %116 : vector<2x1xi32> to vector<2x1xi32>
      %118 = vector.broadcast %117 : vector<2x1xi32> to vector<2x128xi32>
      %c0_69 = arith.constant 0 : index
      %c0_70 = arith.constant 0 : index
      %119 = vector.load %arg16[%c0_69, %c0_70] : memref<2x128xi32, #tpu.memory_space<vmem>>, vector<2x128xi32>
      tpu.vector_store %arg16[%c0_69, %c0_70], %118 {strides = array<i32>} : memref<2x128xi32, #tpu.memory_space<vmem>>, vector<2x128xi32>,
      %120 = vector.shape_cast %115 : vector<2xi32> to vector<2x1xi32>
      %121 = vector.broadcast %120 : vector<2x1xi32> to vector<2x8xi32>
      %122 = arith.cmpi eq, %108, %121 : vector<2x8xi32>
      %123 = arith.extui %122 : vector<2x8xi1> to vector<2x8xi32>
      %124 = arith.sitofp %123 : vector<2x8xi32> to vector<2x8xf32>
      %cst_71 = arith.constant dense<0.000000e+00> : vector<2x32xf32>
      %125 = tpu.matmul %124, %92, %cst_71 {dimension_numbers = #tpu.dot_dimension_numbers<[1], [0], [0], [1], [0, 0, 1, 1], [], []>} : vector<2x8xf32>, vector<8x32xf32>, vector<2x32xf32> -> vector<2x32xf32>
      %c0_72 = arith.constant 0 : index
      %c0_73 = arith.constant 0 : index
      %126 = vector.load %arg14[%c0_72, %c0_73] : memref<2x32xf32, #tpu.memory_space<vmem>>, vector<2x32xf32>
      tpu.vector_store %arg14[%c0_72, %c0_73], %125 {strides = array<i32>} : memref<2x32xf32, #tpu.memory_space<vmem>>, vector<2x32xf32>,
    } else {
    }
    return
  }
  func.func @transform_0(%arg0: i32, %arg1: i32) -> (i32, i32, i32) {
    %c0_i32 = arith.constant 0 : i32
    %c0_i32_0 = arith.constant 0 : i32
    return %arg0, %arg1, %c0_i32 : i32, i32, i32
  }
  func.func @transform_1(%arg0: i32, %arg1: i32) -> (i32, i32, i32) {
    %c0_i32 = arith.constant 0 : i32
    %c0_i32_0 = arith.constant 0 : i32
    return %arg0, %arg1, %c0_i32 : i32, i32, i32
  }
  func.func @transform_2(%arg0: i32, %arg1: i32) -> (i32, i32) {
    %c0_i32 = arith.constant 0 : i32
    return %arg0, %arg1 : i32, i32
  }
  func.func @transform_3(%arg0: i32, %arg1: i32) -> (i32, i32) {
    %c0_i32 = arith.constant 0 : i32
    %c0_i32_0 = arith.constant 0 : i32
    %c0_i32_1 = arith.constant 0 : i32
    return %c0_i32, %c0_i32_0 : i32, i32
  }
  func.func @transform_4(%arg0: i32, %arg1: i32) -> (i32, i32) {
    %c0_i32 = arith.constant 0 : i32
    %c0_i32_0 = arith.constant 0 : i32
    %c0_i32_1 = arith.constant 0 : i32
    return %c0_i32, %c0_i32_0 : i32, i32
  }
  func.func @transform_5(%arg0: i32, %arg1: i32) -> (i32, i32) {
    %c0_i32 = arith.constant 0 : i32
    %c0_i32_0 = arith.constant 0 : i32
    %c0_i32_1 = arith.constant 0 : i32
    return %c0_i32, %c0_i32_0 : i32, i32
  }
  func.func @transform_6(%arg0: i32, %arg1: i32) -> (i32, i32) {
    %c0_i32 = arith.constant 0 : i32
    %c0_i32_0 = arith.constant 0 : i32
    %c0_i32_1 = arith.constant 0 : i32
    return %c0_i32, %c0_i32_0 : i32, i32
  }
  func.func @transform_7(%arg0: i32, %arg1: i32) -> (i32, i32) {
    %c0_i32 = arith.constant 0 : i32
    %c0_i32_0 = arith.constant 0 : i32
    %c0_i32_1 = arith.constant 0 : i32
    return %c0_i32, %c0_i32_0 : i32, i32
  }
  func.func @transform_8(%arg0: i32, %arg1: i32) -> (i32, i32) {
    %c0_i32 = arith.constant 0 : i32
    %c0_i32_0 = arith.constant 0 : i32
    %c0_i32_1 = arith.constant 0 : i32
    return %c0_i32, %c0_i32_0 : i32, i32
  }
  func.func @transform_9(%arg0: i32, %arg1: i32) -> (i32, i32) {
    %c0_i32 = arith.constant 0 : i32
    %c0_i32_0 = arith.constant 0 : i32
    return %arg0, %c0_i32 : i32, i32
  }
  func.func @transform_10(%arg0: i32, %arg1: i32) -> (i32, i32) {
    %c0_i32 = arith.constant 0 : i32
    %c0_i32_0 = arith.constant 0 : i32
    return %arg0, %c0_i32 : i32, i32
  }
  func.func @transform_11(%arg0: i32, %arg1: i32) -> (i32, i32) {
    %c0_i32 = arith.constant 0 : i32
    %c0_i32_0 = arith.constant 0 : i32
    return %arg0, %c0_i32 : i32, i32
  }
  func.func @transform_12(%arg0: i32, %arg1: i32) -> (i32, i32) {
    %c0_i32 = arith.constant 0 : i32
    %c0_i32_0 = arith.constant 0 : i32
    return %arg0, %c0_i32 : i32, i32
  }
  func.func @transform_13(%arg0: i32, %arg1: i32) -> (i32, i32) {
    %c0_i32 = arith.constant 0 : i32
    %c0_i32_0 = arith.constant 0 : i32
    return %arg0, %c0_i32 : i32, i32
  }
  func.func @transform_14(%arg0: i32, %arg1: i32) -> (i32, i32) {
    %c0_i32 = arith.constant 0 : i32
    %c0_i32_0 = arith.constant 0 : i32
    return %arg0, %c0_i32 : i32, i32
  }
}

module attributes {stable_mosaic.version = 11 : i64} {
  func.func @_decoder_main_kernel(%arg0: i32, %arg1: i32, %arg2: memref<8x32xbf16, #tpu.memory_space<vmem>>, %arg3: memref<8x32xbf16, #tpu.memory_space<vmem>>, %arg4: memref<8x1xi32, #tpu.memory_space<vmem>>, %arg5: memref<32x32xbf16, #tpu.memory_space<vmem>>, %arg6: memref<1x32xf32, #tpu.memory_space<vmem>>, %arg7: memref<8x1xi32, #tpu.memory_space<vmem>>, %arg8: memref<8x32xbf16, #tpu.memory_space<vmem>>, %arg9: memref<8x128xf32, #tpu.memory_space<vmem>>, %arg10: memref<8x128xf32, #tpu.memory_space<vmem>>, %arg11: memref<8x32xbf16, #tpu.memory_space<vmem>>, %arg12: memref<8x1xf32, #tpu.memory_space<vmem>>, %arg13: memref<8x1xf32, #tpu.memory_space<vmem>>, %arg14: memref<8x1xf32, #tpu.memory_space<vmem>>) attributes {dimension_semantics = [#tpu.dimension_semantics<parallel>, #tpu.dimension_semantics<arbitrary>], iteration_bounds = array<i64: 2, 1>, scalar_prefetch = 0 : i64, scratch_operands = 4 : i64, tpu.core_type = #tpu.core_type<tc>, window_params = [{transform_indices = @transform_0, window_bounds = array<i64: 8, 32>}, {pipeline_mode = #tpu.pipeline_mode<synchronous>, transform_indices = @transform_1, window_bounds = array<i64: 8, 32>}, {transform_indices = @transform_2, window_bounds = array<i64: 8, 1>}, {transform_indices = @transform_3, window_bounds = array<i64: 32, 32>}, {transform_indices = @transform_4, window_bounds = array<i64: 1, 32>}, {transform_indices = @transform_5, window_bounds = array<i64: 8, 1>}, {transform_indices = @transform_6, window_bounds = array<i64: 8, 32>}, {transform_indices = @transform_7, window_bounds = array<i64: 8, 128>}, {transform_indices = @transform_8, window_bounds = array<i64: 8, 128>}]} {
    %c0_i32 = arith.constant 0 : i32
    %0 = arith.cmpi eq, %arg1, %c0_i32 : i32
    %1 = arith.extui %0 : i1 to i32
    %c0_i32_0 = arith.constant 0 : i32
    %2 = arith.cmpi ne, %1, %c0_i32_0 : i32
    scf.if %2 {
      %cst_28 = arith.constant -1.000000e+30 : f32
      %44 = vector.broadcast %cst_28 : f32 to vector<8x1xf32>
      %c0_29 = arith.constant 0 : index
      %c0_30 = arith.constant 0 : index
      %45 = vector.load %arg12[%c0_29, %c0_30] : memref<8x1xf32, #tpu.memory_space<vmem>>, vector<8x1xf32>
      tpu.vector_store %arg12[%c0_29, %c0_30], %44 {strides = array<i32>} : memref<8x1xf32, #tpu.memory_space<vmem>>, vector<8x1xf32>,
      %cst_31 = arith.constant 0.000000e+00 : f32
      %46 = vector.broadcast %cst_31 : f32 to vector<8x1xf32>
      %c0_32 = arith.constant 0 : index
      %c0_33 = arith.constant 0 : index
      %47 = vector.load %arg13[%c0_32, %c0_33] : memref<8x1xf32, #tpu.memory_space<vmem>>, vector<8x1xf32>
      tpu.vector_store %arg13[%c0_32, %c0_33], %46 {strides = array<i32>} : memref<8x1xf32, #tpu.memory_space<vmem>>, vector<8x1xf32>,
      %cst_34 = arith.constant 0.000000e+00 : f32
      %48 = vector.broadcast %cst_34 : f32 to vector<8x1xf32>
      %c0_35 = arith.constant 0 : index
      %c0_36 = arith.constant 0 : index
      %49 = vector.load %arg14[%c0_35, %c0_36] : memref<8x1xf32, #tpu.memory_space<vmem>>, vector<8x1xf32>
      tpu.vector_store %arg14[%c0_35, %c0_36], %48 {strides = array<i32>} : memref<8x1xf32, #tpu.memory_space<vmem>>, vector<8x1xf32>,
      %c0_37 = arith.constant 0 : index
      %c0_38 = arith.constant 0 : index
      %50 = vector.load %arg4[%c0_37, %c0_38] : memref<8x1xi32, #tpu.memory_space<vmem>>, vector<8x1xi32>
      %51 = tpu.iota {dimensions = array<i32: 1>} : vector<8x8xi32>
      %52 = vector.broadcast %50 : vector<8x1xi32> to vector<8x8xi32>
      %53 = arith.cmpi eq, %52, %51 : vector<8x8xi32>
      %54 = arith.extui %53 : vector<8x8xi1> to vector<8x8xi32>
      %55 = arith.sitofp %54 : vector<8x8xi32> to vector<8x8xf32>
      %56 = arith.truncf %55 : vector<8x8xf32> to vector<8x8xbf16>
      %c0_39 = arith.constant 0 : index
      %c0_40 = arith.constant 0 : index
      %57 = vector.load %arg3[%c0_39, %c0_40] : memref<8x32xbf16, #tpu.memory_space<vmem>>, vector<8x32xbf16>
      %cst_41 = arith.constant dense<0.000000e+00> : vector<8x32xf32>
      %58 = tpu.matmul %56, %57, %cst_41 {dimension_numbers = #tpu.dot_dimension_numbers<[1], [0], [0], [1], [0, 0, 1, 1], [], []>} : vector<8x8xbf16>, vector<8x32xbf16>, vector<8x32xf32> -> vector<8x32xf32>
      %c0_42 = arith.constant 0 : index
      %c0_43 = arith.constant 0 : index
      %59 = vector.load %arg2[%c0_42, %c0_43] : memref<8x32xbf16, #tpu.memory_space<vmem>>, vector<8x32xbf16>
      %60 = arith.extf %59 : vector<8x32xbf16> to vector<8x32xf32>
      %61 = arith.addf %60, %58 : vector<8x32xf32>
      %62 = arith.truncf %61 : vector<8x32xf32> to vector<8x32xbf16>
      %c0_44 = arith.constant 0 : index
      %c0_45 = arith.constant 0 : index
      %63 = vector.load %arg11[%c0_44, %c0_45] : memref<8x32xbf16, #tpu.memory_space<vmem>>, vector<8x32xbf16>
      tpu.vector_store %arg11[%c0_44, %c0_45], %62 {strides = array<i32>} : memref<8x32xbf16, #tpu.memory_space<vmem>>, vector<8x32xbf16>,
    } else {
    }
    %c0 = arith.constant 0 : index
    %c0_1 = arith.constant 0 : index
    %3 = vector.load %arg11[%c0, %c0_1] : memref<8x32xbf16, #tpu.memory_space<vmem>>, vector<8x32xbf16>
    %c0_2 = arith.constant 0 : index
    %c0_3 = arith.constant 0 : index
    %4 = vector.load %arg5[%c0_2, %c0_3] : memref<32x32xbf16, #tpu.memory_space<vmem>>, vector<32x32xbf16>
    %cst = arith.constant dense<0.000000e+00> : vector<8x32xf32>
    %5 = tpu.matmul %3, %4, %cst {dimension_numbers = #tpu.dot_dimension_numbers<[1], [0], [0], [1], [0, 0, 1, 1], [], []>} : vector<8x32xbf16>, vector<32x32xbf16>, vector<8x32xf32> -> vector<8x32xf32>
    %c0_4 = arith.constant 0 : index
    %c0_5 = arith.constant 0 : index
    %6 = vector.load %arg6[%c0_4, %c0_5] : memref<1x32xf32, #tpu.memory_space<vmem>>, vector<1x32xf32>
    %7 = vector.broadcast %6 : vector<1x32xf32> to vector<8x32xf32>
    %8 = arith.addf %5, %7 : vector<8x32xf32>
    %9 = arith.truncf %8 : vector<8x32xf32> to vector<8x32xbf16>
    %c0_6 = arith.constant 0 : index
    %c0_7 = arith.constant 0 : index
    %10 = vector.load %arg8[%c0_6, %c0_7] : memref<8x32xbf16, #tpu.memory_space<vmem>>, vector<8x32xbf16>
    tpu.vector_store %arg8[%c0_6, %c0_7], %9 {strides = array<i32>} : memref<8x32xbf16, #tpu.memory_space<vmem>>, vector<8x32xbf16>,
    %cst_8 = arith.constant dense<0xFF800000> : vector<8xf32>
    %11 = vector.multi_reduction <maximumf>, %8, %cst_8 [1] : vector<8x32xf32> to vector<8xf32>
    %12 = vector.shape_cast %11 : vector<8xf32> to vector<8x1xf32>
    %c0_9 = arith.constant 0 : index
    %c0_10 = arith.constant 0 : index
    %13 = vector.load %arg12[%c0_9, %c0_10] : memref<8x1xf32, #tpu.memory_space<vmem>>, vector<8x1xf32>
    %14 = arith.maximumf %13, %12 : vector<8x1xf32>
    %15 = arith.subf %13, %14 : vector<8x1xf32>
    %16 = math.exp %15 : vector<8x1xf32>
    %c0_11 = arith.constant 0 : index
    %c0_12 = arith.constant 0 : index
    %17 = vector.load %arg13[%c0_11, %c0_12] : memref<8x1xf32, #tpu.memory_space<vmem>>, vector<8x1xf32>
    %18 = arith.mulf %16, %17 : vector<8x1xf32>
    %19 = vector.broadcast %14 : vector<8x1xf32> to vector<8x32xf32>
    %20 = arith.subf %8, %19 : vector<8x32xf32>
    %21 = math.exp %20 : vector<8x32xf32>
    %cst_13 = arith.constant dense<0.000000e+00> : vector<8xf32>
    %22 = vector.multi_reduction <add>, %21, %cst_13 [1] : vector<8x32xf32> to vector<8xf32>
    %23 = vector.shape_cast %22 : vector<8xf32> to vector<8x1xf32>
    %24 = arith.addf %18, %23 : vector<8x1xf32>
    %c0_14 = arith.constant 0 : index
    %c0_15 = arith.constant 0 : index
    %25 = vector.load %arg13[%c0_14, %c0_15] : memref<8x1xf32, #tpu.memory_space<vmem>>, vector<8x1xf32>
    tpu.vector_store %arg13[%c0_14, %c0_15], %24 {strides = array<i32>} : memref<8x1xf32, #tpu.memory_space<vmem>>, vector<8x1xf32>,
    %c0_16 = arith.constant 0 : index
    %c0_17 = arith.constant 0 : index
    %26 = vector.load %arg12[%c0_16, %c0_17] : memref<8x1xf32, #tpu.memory_space<vmem>>, vector<8x1xf32>
    tpu.vector_store %arg12[%c0_16, %c0_17], %14 {strides = array<i32>} : memref<8x1xf32, #tpu.memory_space<vmem>>, vector<8x1xf32>,
    %c32_i32 = arith.constant 32 : i32
    %27 = arith.muli %arg1, %c32_i32 : i32
    %28 = tpu.iota {dimensions = array<i32: 1>} : vector<8x32xi32>
    %29 = vector.broadcast %27 : i32 to vector<8x32xi32>
    %30 = arith.addi %29, %28 : vector<8x32xi32>
    %c0_18 = arith.constant 0 : index
    %c0_19 = arith.constant 0 : index
    %31 = vector.load %arg7[%c0_18, %c0_19] : memref<8x1xi32, #tpu.memory_space<vmem>>, vector<8x1xi32>
    %32 = vector.broadcast %31 : vector<8x1xi32> to vector<8x32xi32>
    %33 = arith.cmpi eq, %30, %32 : vector<8x32xi32>
    %c0_20 = arith.constant 0 : index
    %c0_21 = arith.constant 0 : index
    %34 = vector.load %arg14[%c0_20, %c0_21] : memref<8x1xf32, #tpu.memory_space<vmem>>, vector<8x1xf32>
    %cst_22 = arith.constant 0.000000e+00 : f32
    %35 = vector.broadcast %cst_22 : f32 to vector<8x32xf32>
    %36 = arith.select %33, %8, %35 : vector<8x32xi1>, vector<8x32xf32>
    %cst_23 = arith.constant dense<0.000000e+00> : vector<8xf32>
    %37 = vector.multi_reduction <add>, %36, %cst_23 [1] : vector<8x32xf32> to vector<8xf32>
    %38 = vector.shape_cast %37 : vector<8xf32> to vector<8x1xf32>
    %39 = arith.addf %34, %38 : vector<8x1xf32>
    %c0_24 = arith.constant 0 : index
    %c0_25 = arith.constant 0 : index
    %40 = vector.load %arg14[%c0_24, %c0_25] : memref<8x1xf32, #tpu.memory_space<vmem>>, vector<8x1xf32>
    tpu.vector_store %arg14[%c0_24, %c0_25], %39 {strides = array<i32>} : memref<8x1xf32, #tpu.memory_space<vmem>>, vector<8x1xf32>,
    %c0_i32_26 = arith.constant 0 : i32
    %41 = arith.cmpi eq, %arg1, %c0_i32_26 : i32
    %42 = arith.extui %41 : i1 to i32
    %c0_i32_27 = arith.constant 0 : i32
    %43 = arith.cmpi ne, %42, %c0_i32_27 : i32
    scf.if %43 {
      %c0_28 = arith.constant 0 : index
      %c0_29 = arith.constant 0 : index
      %44 = vector.load %arg12[%c0_28, %c0_29] : memref<8x1xf32, #tpu.memory_space<vmem>>, vector<8x1xf32>
      %c0_30 = arith.constant 0 : index
      %c0_31 = arith.constant 0 : index
      %45 = vector.load %arg13[%c0_30, %c0_31] : memref<8x1xf32, #tpu.memory_space<vmem>>, vector<8x1xf32>
      %46 = math.log %45 : vector<8x1xf32>
      %47 = arith.addf %44, %46 : vector<8x1xf32>
      %48 = vector.shape_cast %47 : vector<8x1xf32> to vector<8x1xf32>
      %49 = vector.broadcast %48 : vector<8x1xf32> to vector<8x128xf32>
      %c0_32 = arith.constant 0 : index
      %c0_33 = arith.constant 0 : index
      %50 = vector.load %arg9[%c0_32, %c0_33] : memref<8x128xf32, #tpu.memory_space<vmem>>, vector<8x128xf32>
      tpu.vector_store %arg9[%c0_32, %c0_33], %49 {strides = array<i32>} : memref<8x128xf32, #tpu.memory_space<vmem>>, vector<8x128xf32>,
      %c0_34 = arith.constant 0 : index
      %c0_35 = arith.constant 0 : index
      %51 = vector.load %arg14[%c0_34, %c0_35] : memref<8x1xf32, #tpu.memory_space<vmem>>, vector<8x1xf32>
      %52 = arith.subf %51, %47 : vector<8x1xf32>
      %53 = vector.shape_cast %52 : vector<8x1xf32> to vector<8x1xf32>
      %54 = vector.broadcast %53 : vector<8x1xf32> to vector<8x128xf32>
      %c0_36 = arith.constant 0 : index
      %c0_37 = arith.constant 0 : index
      %55 = vector.load %arg10[%c0_36, %c0_37] : memref<8x128xf32, #tpu.memory_space<vmem>>, vector<8x128xf32>
      tpu.vector_store %arg10[%c0_36, %c0_37], %54 {strides = array<i32>} : memref<8x128xf32, #tpu.memory_space<vmem>>, vector<8x128xf32>,
    } else {
    }
    return
  }
  func.func @transform_0(%arg0: i32, %arg1: i32) -> (i32, i32) {
    %c0_i32 = arith.constant 0 : i32
    %c0_i32_0 = arith.constant 0 : i32
    return %arg0, %c0_i32 : i32, i32
  }
  func.func @transform_1(%arg0: i32, %arg1: i32) -> (i32, i32) {
    %c0_i32 = arith.constant 0 : i32
    %c0_i32_0 = arith.constant 0 : i32
    %c0_i32_1 = arith.constant 0 : i32
    return %c0_i32, %c0_i32_0 : i32, i32
  }
  func.func @transform_2(%arg0: i32, %arg1: i32) -> (i32, i32) {
    %c0_i32 = arith.constant 0 : i32
    %c0_i32_0 = arith.constant 0 : i32
    return %arg0, %c0_i32 : i32, i32
  }
  func.func @transform_3(%arg0: i32, %arg1: i32) -> (i32, i32) {
    %c0_i32 = arith.constant 0 : i32
    %c0_i32_0 = arith.constant 0 : i32
    return %c0_i32, %arg1 : i32, i32
  }
  func.func @transform_4(%arg0: i32, %arg1: i32) -> (i32, i32) {
    %c0_i32 = arith.constant 0 : i32
    %c0_i32_0 = arith.constant 0 : i32
    return %c0_i32, %arg1 : i32, i32
  }
  func.func @transform_5(%arg0: i32, %arg1: i32) -> (i32, i32) {
    %c0_i32 = arith.constant 0 : i32
    %c0_i32_0 = arith.constant 0 : i32
    return %arg0, %c0_i32 : i32, i32
  }
  func.func @transform_6(%arg0: i32, %arg1: i32) -> (i32, i32) {
    %c0_i32 = arith.constant 0 : i32
    return %arg0, %arg1 : i32, i32
  }
  func.func @transform_7(%arg0: i32, %arg1: i32) -> (i32, i32) {
    %c0_i32 = arith.constant 0 : i32
    %c0_i32_0 = arith.constant 0 : i32
    return %arg0, %c0_i32 : i32, i32
  }
  func.func @transform_8(%arg0: i32, %arg1: i32) -> (i32, i32) {
    %c0_i32 = arith.constant 0 : i32
    %c0_i32_0 = arith.constant 0 : i32
    return %arg0, %c0_i32 : i32, i32
  }
}

module attributes {stable_mosaic.version = 11 : i64} {
  func.func @_normalize_kernel(%arg0: i32, %arg1: i32, %arg2: memref<8x32xbf16, #tpu.memory_space<vmem>>, %arg3: memref<8x128xf32, #tpu.memory_space<vmem>>, %arg4: memref<8x32xbf16, #tpu.memory_space<vmem>>) attributes {dimension_semantics = [#tpu.dimension_semantics<parallel>, #tpu.dimension_semantics<parallel>], iteration_bounds = array<i64: 2, 1>, scalar_prefetch = 0 : i64, scratch_operands = 0 : i64, tpu.core_type = #tpu.core_type<tc>, window_params = [{transform_indices = @transform_0, window_bounds = array<i64: 8, 32>}, {transform_indices = @transform_1, window_bounds = array<i64: 8, 128>}, {transform_indices = @transform_2, window_bounds = array<i64: 8, 32>}]} {
    %c0 = arith.constant 0 : index
    %c0_0 = arith.constant 0 : index
    %0 = vector.load %arg2[%c0, %c0_0] : memref<8x32xbf16, #tpu.memory_space<vmem>>, vector<8x32xbf16>
    %1 = arith.extf %0 : vector<8x32xbf16> to vector<8x32xf32>
    %c0_1 = arith.constant 0 : index
    %c0_2 = arith.constant 0 : index
    %2 = vector.load %arg3[%c0_1, %c0_2] : memref<8x128xf32, #tpu.memory_space<vmem>>, vector<8x1xf32>
    %3 = vector.broadcast %2 : vector<8x1xf32> to vector<8x32xf32>
    %4 = arith.subf %1, %3 : vector<8x32xf32>
    %5 = arith.truncf %4 : vector<8x32xf32> to vector<8x32xbf16>
    %c0_3 = arith.constant 0 : index
    %c0_4 = arith.constant 0 : index
    %6 = vector.load %arg4[%c0_3, %c0_4] : memref<8x32xbf16, #tpu.memory_space<vmem>>, vector<8x32xbf16>
    tpu.vector_store %arg4[%c0_3, %c0_4], %5 {strides = array<i32>} : memref<8x32xbf16, #tpu.memory_space<vmem>>, vector<8x32xbf16>,
    return
  }
  func.func @transform_0(%arg0: i32, %arg1: i32) -> (i32, i32) {
    %c0_i32 = arith.constant 0 : i32
    return %arg0, %arg1 : i32, i32
  }
  func.func @transform_1(%arg0: i32, %arg1: i32) -> (i32, i32) {
    %c0_i32 = arith.constant 0 : i32
    %c0_i32_0 = arith.constant 0 : i32
    return %arg0, %c0_i32 : i32, i32
  }
  func.func @transform_2(%arg0: i32, %arg1: i32) -> (i32, i32) {
    %c0_i32 = arith.constant 0 : i32
    return %arg0, %arg1 : i32, i32
  }
}

</mosaic_0001>

<bundles_post_ra>
// kernel: squeeze.5
= control target key start
LH: loop header
LB: loop body
LE: loop exit
PB: predicated region body
PF: predicated region fallthrough
CT: control target
= control target key end

     0   :  { %vm7_vm0 = vcmask 56320   ;;  %s39_s0 = inlined_call_operand.vmem [shape: f32[14], index: 0, kind: input, shape index: {}]   ;;  %s40_s1 = inlined_call_operand.vmem [shape: f32[2,7], index: 1, kind: output, shape index: {}]  }
   0x1   :  { %v4_v0 = vld [vmem:[%s39_s0] sm:$0x1]  ;;  %s22_s0 = smov 121  }
   0x2   :  { %5 = vst [vmem:[#allocation1] sm:$0x1] %v4_v0 }
   0x9   :  { %v9_v1 = vld [vmem:[#allocation1] sm:$0x1]  }
   0xa   :  { %v6_v2 = vld [vmem:[#allocation1] sm:$0x1]   ;;  %10 = vrot.lane.b32.xlu0 %v9_v1, %s22_s0 }
   0xb   :  { %8 = vst.msk [vmem:[#allocation0] sm:$0x1] %vm7_vm0, %v6_v2  }
  0x7c   :  { %v11_v3 = vpop.permute.xlu0 %10  }
  0x7d   :  { %14 = vst.msk [vmem:[#allocation0 + $0x1] sm:$0x1] %vm7_vm0, %v11_v3  }
  0x84   :  { %v18_v4 = vld [vmem:[#allocation0] sm:$0x3] }
  0x85   :  { %20 = vst [vmem:[%s40_s1] sm:$0x3] %v18_v4 }

// kernel: fix_vqvae_forward.5
= control target key start
LH: loop header
LB: loop body
LE: loop exit
PB: predicated region body
PF: predicated region fallthrough
CT: control target
= control target key end

     0   :  { %s361_s9 = smov 0   ;;  %s363_s10 = smov 0   ;;  %s394_s0 = inlined_call_operand.vmem [shape: bf16[16,32], index: 0, kind: input, shape index: {}, may-alias: {0,2}]   ;;  %s395_s1 = inlined_call_operand.vmem [shape: f32[16,128], index: 1, kind: input, shape index: {}]   ;;  %s396_s2 = inlined_call_operand.vmem [shape: bf16[16,32], index: 2, kind: output, shape index: {}, may-alias: {0,2}]  }
   0x1   :  { %s365_s11 = smov 0  }
   0x2 LB: > { %s24_s12 = sadd.s32 1, %s339_s10  ;;  %p289_p0 = scmp.ge.s32.totalorder %s343_s11, 1  ;;  %s343_s11 = sphi %s365_s11, %s12_s11   ;;  %s339_s10 = sphi %s363_s10, %s398_s10   ;;  %s335_s9 = sphi %s361_s9, %s397_s9  }
   0x3   : > { %p26_p1 = scmp.ge.s32.totalorder %s24_s12, 2  ;;  %p139_p2 = scmp.lt.s32.totalorder %s343_s11, 3 }
   0x5   : > { %s400_s12 = smov (%p26_p1, %s24_s12), 0  ;;  %p140_p3 = pnand %p289_p0, %p139_p2 }
   0x6   : > { %p169_p4 = scmp.lt.s32.totalorder (!%p140_p3), %s335_s9, 1  ;;  %v345_v0 = vmov (!%p140_p3), 0   ;;  %vm197_vm0 = vcmask (!%p140_p3), 257024  }
   0x7   : > { %143 = sbr.rel (%p140_p3) target bundleno = 151 (0x97), region = 28  ;;  %320 = vset.pattern.permute.xlu0 (!%p140_p3), %v345_v0 }
   0xe   : > { %s402_s9 = smov (!%p169_p4, %s335_s9), 1 }
   0xf   : > { %s291_s13 = sshll.u32 %s402_s9, 3  ;;  %s290_s17 = sshll.u32 %s402_s9, 2 }
  0x10   : > { %s179_s16 = scalar_lea.vmem %s395_s1, %s291_s13  ;;  %s175_s20 = scalar_lea.vmem %s394_s0, %s290_s17 }
  0x11   : > { %v189_v1 = vld [vmem:[%s179_s16] sm:$0xff]  ;;  %s186_s23 = scalar_lea.vmem %s396_s2, %s290_s17 }
  0x12   : > { %192 = vperm.xlu0 %320, %v189_v1   ;;  %v187_v2 = vld [vmem:[%s175_s20] sm:$0xf] }
  0x13   : > { %v188_v3 = vunpack.c.l.bf16 %v187_v2 }
  0x91   : > { %v193_v4 = vpop.permute.xlu0 %192 }
  0x92   : > { %v195_v5 = vsub.f32 %v188_v3, %v193_v4 }
  0x94   : > { %v196_v6 = vpack.c.bf16 %v195_v5, %v195_v5 }
  0x96   : > { %198 = vst.msk [vmem:[%s186_s23] sm:$0xf] %vm197_vm0, %v196_v6 }
  0x97 PF: > { %s12_s11 = sadd.s32 1, %s343_s11   ;;  %s397_s9 = smov %s339_s10 }
  0x98   : > { %p9_p5 = scmp.ge.s32.totalorder %s12_s11, 4   ;;  %s398_s10 = smov %s400_s12 }
  0x9a   :  { %11 = sbr.rel (!%p9_p5) target bundleno = 2 (0x2), region = 61 }

// kernel: fix_vqvae_forward.4
= control target key start
LH: loop header
LB: loop body
LE: loop exit
PB: predicated region body
PF: predicated region fallthrough
CT: control target
= control target key end

     0   :  { %s952_s27 = smov 0   ;;  %s954_s28 = smov 0   ;;  %s1031_s0 = inlined_call_operand.vmem [shape: bf16[16,32], index: 0, kind: input, shape index: {}]   ;;  %s1032_s1 = inlined_call_operand.vmem [shape: bf16[8,32], index: 1, kind: input, shape index: {}]   ;;  %s1033_s2 = inlined_call_operand.vmem [shape: s32[16,1], index: 2, kind: input, shape index: {}]   ;;  %s1034_s3 = inlined_call_operand.vmem [shape: bf16[32,32], index: 3, kind: input, shape index: {}]   ;;  %s1035_s4 = inlined_call_operand.vmem [shape: f32[1,32], index: 4, kind: input, shape index: {}]   ;;  %s1036_s5 = inlined_call_operand.vmem [shape: s32[16,1], index: 5, kind: input, shape index: {}]   ;;  %s1037_s6 = inlined_call_operand.vmem [shape: bf16[16,32], index: 6, kind: output, shape index: {0}]   ;;  %s1038_s7 = inlined_call_operand.vmem [shape: f32[16,128], index: 7, kind: output, shape index: {1}]   ;;  %s1039_s8 = inlined_call_operand.vmem [shape: f32[16,128], index: 8, kind: output, shape index: {2}]  }
   0x1   :  { %s956_s29 = smov 0  }
   0x2 LB: > { %s31_s30 = sadd.s32 1, %s897_s28  ;;  %p807_p0 = scmp.ge.s32.totalorder %s901_s29, 1  ;;  %s901_s29 = sphi %s956_s29, %s19_s29   ;;  %s897_s28 = sphi %s954_s28, %s1041_s28   ;;  %s893_s27 = sphi %s952_s27, %s1040_s27  }
   0x3   : > { %p33_p1 = scmp.ge.s32.totalorder %s31_s30, 2  ;;  %p315_p2 = scmp.lt.s32.totalorder %s901_s29, 3 }
   0x5   : > { %s1043_s30 = smov (%p33_p1, %s31_s30), 0  ;;  %p316_p3 = pnand %p807_p0, %p315_p2 }
   0x6   : > { %p373_p4 = scmp.lt.s32.totalorder (!%p316_p3), %s893_s27, 1  ;;  %v903_v0 = vmov (!%p316_p3), 0   ;;  %v904_v1 = vmov (!%p316_p3), 0.0   ;;  %v426_v3 = vld [vmem:[%s1032_s1] sm:$0xf] (!%p316_p3)  ;;  %vm431_vm0 = vcmask (!%p316_p3), 1043456   ;;  %v417_v5 = vlaneseq (!%p316_p3) }
   0x7   : > { %319 = sbr.rel (%p316_p3) target bundleno = 1175 (0x497), region = 44  ;;  %869 = vset.pattern.permute.xlu0 (!%p316_p3), %v903_v0  ;;  %827 = vmatprep.subr.bf16.mxu0 (!%p316_p3), %v904_v1  ;;  %v433_v4 = vsel (!%p316_p3), %vm431_vm0, %v426_v3, 0  ;;  %vm905_vm1 = vmmov (!%p316_p3), 0   ;;  %vm427_vm3 = vcmask (!%p316_p3), 64512   ;;  %v871_v10 = vld [vmem:[%s1034_s3] sm:$0xff] (!%p316_p3)   ;;  %v872_v11 = vld [vmem:[%s1034_s3 + $0x8] sm:$0xff] (!%p316_p3)  }
   0x8   : > { %833 = vmatprep.subr.bf16.mxu1 (!%p316_p3), %v904_v1  ;;  %870 = vset.pattern.permute.xlu1 (!%p316_p3), %v903_v0  ;;  %v418_v6 = vand.u32 (!%p316_p3), 127, %v417_v5  ;;  %vm479_vm4 = vcmask (!%p316_p3), 257024   ;;  %vm505_vm5 = vcmask (!%p316_p3), 261120   ;;  %vm412_vm6 = vcmask (!%p316_p3), 7168   ;;  %v816_v22 = vld [vmem:[%s1035_s4] ss:$0 sm:$0xff] (!%p316_p3) }
   0x9   : > { %828 = vmatpush3.bf16.msra.mxu0 (!%p316_p3), %v433_v4  ;;  %829 = vmatprep.mubr.msk.bf16.mxu0 (!%p316_p3), %vm905_vm1, %v904_v1  ;;  %v906_v21 = vmov (!%p316_p3), -1e+30   ;;  %414 = vst.msk [vmem:[#allocation4] sm:$0xff] (!%p316_p3), %vm412_vm6, %v904_v1  ;;  %415 = vst.msk [vmem:[#allocation5] sm:$0xff] (!%p316_p3), %vm412_vm6, %v904_v1 }
   0xa   : > { %837 = vmatprep.mubr.msk.bf16.mxu1 (!%p316_p3), %vm905_vm1, %v904_v1  ;;  %834 = vmatpush3.bf16.msra.mxu1 (!%p316_p3), %v871_v10  ;;  %413 = vst.msk [vmem:[#allocation3] sm:$0xff] (!%p316_p3), %vm412_vm6, %v906_v21 }
   0xb   : > { %835 = vmatprep.subr.bf16.mxu1 (!%p316_p3), %v904_v1 }
   0xe   : > { %s1045_s27 = smov (!%p373_p4, %s893_s27), 1  ;;  %836 = vmatpush3.bf16.msra.mxu1 %v872_v11 }
   0xf   : > { %s973_s9 = sshll.u32 %s1045_s27, 3  ;;  %s808_s19 = sshll.u32 %s1045_s27, 2 }
  0x10   : > { %s380_s12 = scalar_lea.vmem %s1033_s2, %s973_s9  ;;  %s376_s22 = scalar_lea.vmem %s1031_s0, %s808_s19  ;;  %v587_v44 = vld [vmem:[#allocation5] sm:$0xff]  ;;  %v560_v48 = vld [vmem:[#allocation4] sm:$0xff] }
  0x11   : > { %v416_v2 = vld [vmem:[%s380_s12] sm:$0xff]  ;;  %s398_s27 = scalar_lea.vmem %s1037_s6, %s808_s19  ;;  %s391_s12 = scalar_lea.vmem %s1036_s5, %s973_s9 }
  0x12   : > { %420 = vperm.xlu0 %869, %v416_v2   ;;  %v475_v12 = vld [vmem:[%s376_s22] sm:$0xf]  ;;  %v555_v30 = vld [vmem:[#allocation3] sm:$0xff]  ;;  %s402_s15 = scalar_lea.vmem %s1038_s7, %s973_s9  ;;  %s406_s18 = scalar_lea.vmem %s1039_s8, %s973_s9 }
  0x13   : > { %v476_v13 = vunpack.c.l.bf16 %v475_v12  ;;  %v582_v34 = vld [vmem:[%s391_s12] sm:$0xff] }
  0x91   : > { %v421_v7 = vpop.permute.xlu0 %420 }
  0x92   : > { %vm422_vm2 = vcmp.eq.s32.totalorder %v421_v7, %v418_v6 }
  0x93   : > { %v814_v8 = vsel %vm422_vm2, 1.0, %v904_v1 }
  0x94   : > { %v425_v9 = vpack.c.bf16 %v814_v8, %v814_v8 }
  0x96   : > { %830 = vmatmul.mubr.msk.bf16.vlgmr.msra.gmra.mrb[0].mxu0 %vm427_vm3, %v425_v9 }
 0x169   : > { %v469_v14 = vpop.f32.mrb[0].mxu0 }
 0x16a   : > { %v477_v15 = vadd.f32 %v476_v13, %v469_v14  ;;  %v831_v16 = vpop.f32.mrb[1].mxu0 }
 0x16b   : > { %v472_v17 = vpop.f32.mrb[2].mxu0 }
 0x16c   : > { %v478_v18 = vpack.c.bf16 %v477_v15, %v477_v15  ;;  %v832_v19 = vpop.f32.mrb[3].mxu0 }
 0x16e   : > { %480 = vst.msk [vmem:[#allocation2] sm:$0xf] %vm479_vm4, %v478_v18 }
 0x175   : > { %v481_v20 = vld [vmem:[#allocation2] sm:$0xf] }
 0x176   : > { %838 = vmatmul.mubr.msk.bf16.vlgmr.msra.gmra.mrb[0].mxu1 %vm505_vm5, %v481_v20 }
 0x249   : > { %v543_v23 = vpop.f32.mrb[0].mxu1 }
 0x24a   : > { %v544_v24 = vadd.f32 %v816_v22, %v543_v23  ;;  %v839_v25 = vpop.f32.mrb[1].mxu1 }
 0x24b   : > { %v546_v26 = vpop.f32.mrb[2].mxu1 }
 0x24c   : > { %v549_v27 = vpack.c.bf16 %v544_v24, %v544_v24  ;;  %v840_v28 = vpop.f32.mrb[3].mxu1  ;;  %v552_v29 = vsel %vm505_vm5, %v544_v24, -inf }
 0x24d   : > { %553 = vmax.xlane.f32.xlu0 %v552_v29 }
 0x24e   : > { %551 = vst.msk [vmem:[%s398_s27] sm:$0xf] %vm479_vm4, %v549_v27 }
 0x2da   : > { %v554_v31 = vpop.xlane.xlu0 %553 }
 0x2db   : > { %v556_v32 = vmax.f32 %v555_v30, %v554_v31 }
 0x2dd   : > { %v557_v33 = vsub.f32 %v555_v30, %v556_v32  ;;  %576 = vst.msk [vmem:[#allocation3] sm:$0xff] %vm412_vm6, %v556_v32  ;;  %564 = vperm.xlu1 %870, %v556_v32  }
 0x2df   : > { %v558_v43 = vmul.f32 1.442695, %v557_v33 }
 0x2e1   : > { %584 = vperm.xlu1 %870, %v582_v34  }
 0x2e4   : > { %v597_v55 = vld [vmem:[#allocation3] sm:$0xff] }
 0x35c   : > { %v565_v35 = vpop.permute.xlu1 %564 }
 0x35d   : > { %v567_v36 = vsub.f32 %v544_v24, %v565_v35 }
 0x35f   : > { %v568_v37 = vmul.f32 1.442695, %v567_v36 }
 0x360   : > { %v585_v38 = vpop.permute.xlu1 %584 }
 0x361   : > { %873 = vpow2.f32 %v568_v37  ;;  %vm586_vm7 = vcmp.eq.s32.totalorder %v418_v6, %v585_v38 }
 0x362   : > { %v588_v39 = vsel %vm586_vm7, %v544_v24, 0.0  ;;  %875 = vpow2.f32 %v558_v43 }
 0x363   : > { %v589_v40 = vsel %vm505_vm5, %v588_v39, 0.0 }
 0x364   : > { %590 = vadd.xlane.f32.xlu0 %v589_v40 }
 0x36b   : > { %v874_v41 = vpop.eup %873 }
 0x36c   : > { %v570_v42 = vsel %vm505_vm5, %v874_v41, 0.0  ;;  %v876_v47 = vpop.eup %875 }
 0x36d   : > { %571 = vadd.xlane.f32.xlu1 %v570_v42  ;;  %v561_v49 = vmul.f32 %v876_v47, %v560_v48 }
 0x3f1   : > { %v591_v45 = vpop.xlane.xlu0 %590 }
 0x3f2   : > { %v592_v46 = vadd.f32 %v591_v45, %v587_v44 }
 0x3f4   : > { %593 = vst.msk [vmem:[#allocation5] sm:$0xff] %vm412_vm6, %v592_v46 }
 0x3fa   : > { %v572_v50 = vpop.xlane.xlu1 %571 }
 0x3fb   : > { %v573_v51 = vadd.f32 %v572_v50, %v561_v49  ;;  %v608_v57 = vld [vmem:[#allocation5] sm:$0xff] }
 0x3fd   : > { %575 = vst.msk [vmem:[#allocation4] sm:$0xff] %vm412_vm6, %v573_v51 }
 0x404   : > { %v598_v52 = vld [vmem:[#allocation4] sm:$0xff] }
 0x405   : > { %877 = vlog2.f32 %v598_v52 }
 0x40f   : > { %v878_v53 = vpop.eup %877 }
 0x410   : > { %v600_v54 = vmul.f32 0.6931472, %v878_v53 }
 0x412   : > { %v601_v56 = vadd.f32 %v600_v54, %v597_v55 }
 0x414   : > { %604 = vperm.xlu0 %869, %v601_v56   ;;  %v609_v58 = vsub.f32 %v608_v57, %v601_v56 }
 0x416   : > { %612 = vperm.xlu1 %870, %v609_v58  }
 0x493   : > { %v605_v59 = vpop.permute.xlu0 %604 }
 0x494   : > { %607 = vst [vmem:[%s402_s15] sm:$0xff] %v605_v59 }
 0x495   : > { %v613_v60 = vpop.permute.xlu1 %612 }
 0x496   : > { %615 = vst [vmem:[%s406_s18] sm:$0xff] %v613_v60 }
 0x497 PF: > { %s19_s29 = sadd.s32 1, %s901_s29   ;;  %s1040_s27 = smov %s897_s28 }
 0x498   : > { %p16_p5 = scmp.ge.s32.totalorder %s19_s29, 4   ;;  %s1041_s28 = smov %s1043_s30 }
 0x49a   :  { %18 = sbr.rel (!%p16_p5) target bundleno = 2 (0x2), region = 118 }

// kernel: fix_vqvae_forward.3
= control target key start
LH: loop header
LB: loop body
LE: loop exit
PB: predicated region body
PF: predicated region fallthrough
CT: control target
= control target key end

     0   :  { %vm50_vm0 = vcmask 58368   ;;  %vm46_vm1 = vcmask 1024   ;;  %v785_v1 = vmov 0.0   ;;  %v61_v4 = vlaneseq  ;;  %s993_s2 = inlined_call_operand.vmem [shape: f32[2,8], index: 2, kind: input, shape index: {}]   ;;  %s994_s3 = inlined_call_operand.vmem [shape: bf16[32,32], index: 3, kind: input, shape index: {}]   ;;  %s995_s0 = inlined_call_operand.vmem [shape: bf16[2,8,32], index: 0, kind: input, shape index: {}]   ;;  %s996_s1 = inlined_call_operand.vmem [shape: bf16[2,8,32], index: 1, kind: input, shape index: {}]   ;;  %s997_s5 = inlined_call_operand.vmem [shape: bf16[32,32], index: 5, kind: input, shape index: {}]   ;;  %s998_s7 = inlined_call_operand.vmem [shape: f32[8,32], index: 7, kind: input, shape index: {}]   ;;  %s999_s4 = inlined_call_operand.vmem [shape: f32[1,32], index: 4, kind: input, shape index: {}]   ;;  %s1000_s6 = inlined_call_operand.vmem [shape: f32[1,32], index: 6, kind: input, shape index: {}]   ;;  %s1001_s9 = inlined_call_operand.vmem [shape: f32[2,32], index: 9, kind: output, shape index: {0}]   ;;  %s1002_s10 = inlined_call_operand.vmem [shape: f32[2,32], index: 10, kind: output, shape index: {1}]   ;;  %s1003_s8 = inlined_call_operand.vmem [shape: f32[8,32], index: 8, kind: input, shape index: {}]   ;;  %s1004_s13 = inlined_call_operand.vmem [shape: s32[2,128], index: 13, kind: output, shape index: {4}]   ;;  %s1005_s11 = inlined_call_operand.vmem [shape: f32[2,32], index: 11, kind: output, shape index: {2}]   ;;  %s1006_s14 = inlined_call_operand.vmem [shape: s32[2,128], index: 14, kind: output, shape index: {5}]   ;;  %s1007_s12 = inlined_call_operand.vmem [shape: f32[2,32], index: 12, kind: output, shape index: {3}]  }
   0x1   :  { %v48_v0 = vld [vmem:[%s993_s2] sm:$0x3]  ;;  %47 = vst.msk [vmem:[#allocation4] sm:$0x3] %vm46_vm1, %v785_v1  ;;  %734 = vmatprep.subr.bf16.mxu0 %v785_v1  ;;  %742 = vmatprep.subr.mxu1 %v785_v1  ;;  %v786_v11 = vmov 0   ;;  %vm43_vm2 = vcmask 254976  }
   0x2   :  { %v51_v2 = vsel %vm50_vm0, %v48_v0, 0.0  ;;  %v57_v3 = vpack.c.bf16 %v48_v0, %v48_v0  ;;  %v872_v5 = vshrl.u32 %v61_v4, 7  ;;  %773 = vset.pattern.permute.xlu1 %v786_v11  ;;  %774 = vset.pattern.permute.xlu0 %v786_v11  ;;  %44 = vst.msk [vmem:[#allocation2] sm:$0x3] %vm43_vm2, %v785_v1  ;;  %45 = vst.msk [vmem:[#allocation3] sm:$0x3] %vm43_vm2, %v785_v1 }
   0x3   :  { %52 = vadd.xlane.f32.xlu0 %v51_v2  ;;  %v775_v13 = vld [vmem:[%s994_s3] sm:$0xff]   ;;  %vm85_vm3 = vcmask 261120   ;;  %vm102_vm4 = vcmask 1041409   ;;  %vm787_vm5 = vmmov 0   ;;  %vm340_vm9 = vcmask 64512  }
   0x4   :  { %v68_v6 = vshrl.u32 %v57_v3, 16  ;;  %v63_v7 = vsub.s32 0, %v872_v5  ;;  %v59_v10 = vpack.i.b16 %v57_v3, %v57_v3  ;;  %735 = vmatpush3.bf16.msra.mxu0 %v775_v13  ;;  %v80_v14 = vld [vmem:[%s995_s0 + $0x4] sm:$0xf]  ;;  %v79_v30 = vld [vmem:[%s995_s0] sm:$0xf]  ;;  %738 = vmatprep.mubr.msk.bf16.mxu0 %vm787_vm5, %v785_v1 }
   0x5   :  { %736 = vmatprep.subr.bf16.mxu0 %v785_v1  ;;  %v110_v15 = vld [vmem:[%s996_s1 + $0x4] sm:$0xf]  ;;  %v109_v31 = vld [vmem:[%s996_s1] sm:$0xf]  ;;  %744 = vmatprep.mubr.msk.f32.mxu1 %vm787_vm5, %v785_v1 }
   0x6   :  { %v69_v8 = vpack.i.b16 %v68_v6, %v68_v6  ;;  %v64_v12 = vrot.slane %v59_v10, %v63_v7  ;;  %v777_v11 = vld [vmem:[%s997_s5] sm:$0xff]  }
   0x8   :  { %v74_v9 = vrot.slane %v69_v8, %v63_v7  ;;  %v49_v23 = vld [vmem:[#allocation4] sm:$0x3]  ;;  %v776_v7 = vld [vmem:[%s994_s3 + $0x8] sm:$0xff]  }
   0x9   :  { %v78_v59 = vld [vmem:[#allocation2] sm:$0x3]  ;;  %v108_v60 = vld [vmem:[#allocation3] sm:$0x3]  ;;  %737 = vmatpush3.bf16.msra.mxu0 %v776_v7 }
   0xa   :  { %76 = vbcast.lane.c.b16.xlu1 %v74_v9, 256  ;;  %752 = vmatprep.subr.bf16.mxu0 %v785_v1 }
  0x19   :  { %66 = vbcast.lane.c.b16.xlu0 %v64_v12, 256 }
  0x7c   :  { %v77_v16 = vpop.permute.xlu1 %76 }
  0x7d   :  { %v82_v17 = vmul.bf16 %v80_v14, %v77_v16  ;;  %v112_v18 = vmul.bf16 %v110_v15, %v77_v16  ;;  %v778_v14 = vld [vmem:[%s997_s5 + $0x8] sm:$0xff]  }
  0x7f   :  { %v84_v19 = vunpack.c.l.bf16 %v82_v17  ;;  %v114_v20 = vunpack.c.l.bf16 %v112_v18  ;;  %v218_v17 = vld [vmem:[%s998_s7] sm:$0xff] }
  0x80   :  { %743 = vmatpush3.xpose.msk.msra.mxu1 %vm85_vm3, %v218_v17  ;;  %v223_v18 = vmul.f32 %v218_v17, %v218_v17 }
  0x81   :  { %v93_v21 = vsel %vm85_vm3, %v84_v19, 0.0  ;;  %v122_v22 = vsel %vm85_vm3, %v114_v20, 0.0  ;;  %747 = vmatprep.subr.mxu1 %v785_v1  ;;  %v704_v20 = vld [vmem:[%s999_s4] ss:$0 sm:$0xff] }
  0x82   :  { %v94_v24 = vrot.slane %v93_v21, 4  ;;  %v123_v25 = vrot.slane %v122_v22, 4  ;;  %v224_v19 = vsel %vm85_vm3, %v223_v18, 0.0 }
  0x83   :  { %225 = vadd.xlane.f32.xlu0 %v224_v19 }
  0x84   :  { %v95_v28 = vadd.f32 %v94_v24, %v93_v21  ;;  %v124_v29 = vadd.f32 %v123_v25, %v122_v22 }
  0x86   :  { %v96_v35 = vrot.slane %v95_v28, 2  ;;  %v125_v36 = vrot.slane %v124_v29, 2 }
  0x88   :  { %v97_v42 = vadd.f32 %v96_v35, %v95_v28  ;;  %v126_v43 = vadd.f32 %v125_v36, %v124_v29  ;;  %v947_v36 = vand.u32 127, %v61_v4 }
  0x8a   :  { %v98_v49 = vrot.slane %v97_v42, 1  ;;  %v127_v50 = vrot.slane %v126_v43, 1 }
  0x8c   :  { %v99_v55 = vadd.f32 %v98_v49, %v97_v42  ;;  %v128_v56 = vadd.f32 %v127_v50, %v126_v43 }
  0x90   :  { %v53_v26 = vpop.xlane.xlu0 %52 }
  0x91   :  { %v54_v27 = vadd.f32 %v53_v26, %v49_v23  ;;  %v712_v26 = vld [vmem:[%s1000_s6] ss:$0 sm:$0xff] }
  0x93   :  { %56 = vst.msk [vmem:[#allocation4] sm:$0x3] %vm46_vm1, %v54_v27 }
  0x94   :  { %v67_v32 = vpop.permute.xlu0 %66 }
  0x95   :  { %v81_v33 = vmul.bf16 %v79_v30, %v67_v32  ;;  %v111_v34 = vmul.bf16 %v109_v31, %v67_v32 }
  0x97   :  { %v83_v37 = vunpack.c.l.bf16 %v81_v33  ;;  %v113_v38 = vunpack.c.l.bf16 %v111_v34 }
  0x99   :  { %v86_v39 = vsel %vm85_vm3, %v83_v37, 0.0  ;;  %v115_v40 = vsel %vm85_vm3, %v113_v38, 0.0  ;;  %v951_v37 = vsub.s32 %v947_v36, %v872_v5 }
  0x9a   :  { %v138_v41 = vld [vmem:[#allocation4] sm:$0x3]  ;;  %v87_v44 = vrot.slane %v86_v39, 4  ;;  %v116_v45 = vrot.slane %v115_v40, 4 }
  0x9b   :  { %v139_v46 = vmax.f32 %v138_v41, 1.0 }
  0x9c   :  { %v88_v47 = vadd.f32 %v87_v44, %v86_v39  ;;  %v117_v48 = vadd.f32 %v116_v45, %v115_v40 }
  0x9d   :  { %779 = vrcp.f32 %v139_v46 }
  0x9e   :  { %v89_v51 = vrot.slane %v88_v47, 2  ;;  %v118_v52 = vrot.slane %v117_v48, 2 }
  0xa0   :  { %v90_v53 = vadd.f32 %v89_v51, %v88_v47  ;;  %v119_v54 = vadd.f32 %v118_v52, %v117_v48 }
  0xa2   :  { %v91_v57 = vrot.slane %v90_v53, 1  ;;  %v120_v58 = vrot.slane %v119_v54, 1 }
  0xa4   :  { %v92_v61 = vadd.f32 %v91_v57, %v90_v53  ;;  %v121_v62 = vadd.f32 %v120_v58, %v119_v54 }
  0xa6   :  { %v103_v63 = vsel %vm102_vm4, %v99_v55, %v92_v61  ;;  %v131_v0 = vsel %vm102_vm4, %v128_v56, %v121_v62  ;;  %v486_v56 = vld [vmem:[%s1003_s8] sm:$0xff] }
  0xa7   :  { %v780_v2 = vpop.eup %779  ;;  %v105_v3 = vadd.f32 %v103_v63, %v78_v59  ;;  %v133_v6 = vadd.f32 %v131_v0, %v108_v60  ;;  %v491_v57 = vmul.f32 %v486_v56, %v486_v56 }
  0xa8   :  { %145 = vperm.xlu1 %773, %v780_v2  }
  0xa9   :  { %107 = vst.msk [vmem:[#allocation2] sm:$0x3] %vm43_vm2, %v105_v3  ;;  %134 = vst.msk [vmem:[#allocation3] sm:$0x3] %vm43_vm2, %v133_v6  ;;  %v492_v58 = vsel %vm85_vm3, %v491_v57, 0.0 }
  0xaa   :  { %493 = vadd.xlane.f32.xlu0 %v492_v58 }
  0xb0   :  { %v142_v9 = vld [vmem:[#allocation2] sm:$0x3]  ;;  %v415_v13 = vld [vmem:[#allocation3] sm:$0x3] }
 0x110   :  { %v226_v38 = vpop.xlane.xlu0 %225 }
 0x111   :  { %v311_v42 = vrot.slane %v226_v38, %v951_v37 }
 0x127   :  { %v146_v8 = vpop.permute.xlu1 %145 }
 0x128   :  { %v148_v10 = vmul.f32 %v146_v8, %v142_v9  ;;  %v416_v15 = vmul.f32 %v415_v13, %v146_v8 }
 0x12a   :  { %v149_v12 = vpack.c.bf16 %v148_v10, %v148_v10  ;;  %v417_v16 = vpack.c.bf16 %v416_v15, %v416_v15 }
 0x12c   :  { %739 = vmatmul.mubr.msk.bf16.vlgmr.msra.gmra.mrb[0].mxu0 %vm85_vm3, %v149_v12 }
 0x12d   :  { %753 = vmatpush3.bf16.msra.mxu0 %v777_v11  ;;  %756 = vmatprep.mubr.msk.bf16.mxu0 %vm787_vm5, %v785_v1 }
 0x12e   :  { %754 = vmatprep.subr.bf16.mxu0 %v785_v1 }
 0x131   :  { %755 = vmatpush3.bf16.msra.mxu0 %v778_v14 }
 0x134   :  { %757 = vmatmul.mubr.msk.bf16.vlgmr.msra.gmra.mrb[4].mxu0 %vm85_vm3, %v417_v16 }
 0x137   :  { %v494_v7 = vpop.xlane.xlu0 %493 }
 0x138   :  { %v577_v11 = vrot.slane %v494_v7, %v951_v37 }
 0x1ff   :  { %v210_v21 = vpop.f32.mrb[0].mxu0 }
 0x200   :  { %v211_v22 = vadd.f32 %v704_v20, %v210_v21  ;;  %v740_v23 = vpop.f32.mrb[1].mxu0 }
 0x201   :  { %v213_v24 = vpop.f32.mrb[2].mxu0 }
 0x202   :  { %781 = vtanh.f32 %v211_v22  ;;  %v741_v25 = vpop.f32.mrb[3].mxu0 }
 0x207   :  { %v478_v27 = vpop.f32.mrb[4].mxu0 }
 0x208   :  { %v479_v28 = vadd.f32 %v712_v26, %v478_v27  ;;  %v758_v29 = vpop.f32.mrb[5].mxu0 }
 0x209   :  { %v481_v30 = vpop.f32.mrb[6].mxu0 }
 0x20a   :  { %783 = vtanh.f32 %v479_v28  ;;  %v759_v31 = vpop.f32.mrb[7].mxu0 }
 0x20c   :  { %v782_v32 = vpop.eup %781 }
 0x20d   :  { %217 = vst.msk [vmem:[%s1001_s9] sm:$0x3] %vm43_vm2, %v782_v32  ;;  %745 = vmatmul.mubr.msk.f32.vlgmr.msra.gmra.mrb[0].mxu1 %vm85_vm3, %v782_v32  ;;  %v219_v33 = vmul.f32 %v782_v32, %v782_v32 }
 0x20e   :  { %748 = vmatpush3.msra.mxu1 %v218_v17  ;;  %749 = vmatprep.mubr.msk.f32.mxu1 %vm787_vm5, %v785_v1 }
 0x20f   :  { %v220_v34 = vsel %vm43_vm2, %v219_v33, 0.0  ;;  %760 = vmatprep.subr.mxu1 %v785_v1 }
 0x210   :  { %221 = vadd.xlane.f32.xlu1 %v220_v34 }
 0x214   :  { %v784_v35 = vpop.eup %783 }
 0x215   :  { %485 = vst.msk [vmem:[%s1002_s10] sm:$0x3] %vm43_vm2, %v784_v35  ;;  %v487_v54 = vmul.f32 %v784_v35, %v784_v35 }
 0x217   :  { %v488_v55 = vsel %vm43_vm2, %v487_v54, 0.0 }
 0x29d   :  { %v222_v43 = vpop.xlane.xlu1 %221 }
 0x2e0   :  { %v299_v39 = vpop.f32.mrb[0].mxu1 }
 0x2e1   :  { %v303_v40 = vmul.f32 2.0, %v299_v39  ;;  %v746_v41 = vpop.f32.mrb[1].mxu1 }
 0x2e3   :  { %v304_v44 = vsub.f32 %v222_v43, %v303_v40 }
 0x2e5   :  { %v313_v45 = vadd.f32 %v311_v42, %v304_v44 }
 0x2e7   :  { %v314_v46 = vsel %vm50_vm0, %v313_v45, inf }
 0x2e8   :  { %315 = vmin.xlane.f32.xlu1 %v314_v46 }
 0x375   :  { %v316_v47 = vpop.xlane.xlu1 %315 }
 0x376   :  { %vm317_vm6 = vcmp.le.f32.partialorder %v313_v45, %v316_v47 }
 0x377   :  { %v318_v4 = vsel %vm317_vm6, %v947_v36, 8 }
 0x378   :  { %v319_v48 = vsel %vm50_vm0, %v318_v4, 2147483647 }
 0x379   :  { %v321_v5 = vshra.s32 %v319_v48, 16  ;;  %v320_v50 = vand.u32 65535, %v319_v48 }
 0x37b   :  { %v323_v49 = vcvt.s32.f32 %v321_v5  ;;  %v322_v52 = vcvt.s32.f32 %v320_v50 }
 0x37d   :  { %324 = vmin.xlane.f32.xlu1 %v323_v49 }
 0x40a   :  { %v325_v51 = vpop.xlane.xlu1 %324 }
 0x40b   :  { %vm326_vm7 = vcmp.eq.f32.partialorder %v323_v49, %v325_v51  ;;  %v331_v59 = vcvt.f32.s32 %v325_v51 }
 0x40c   :  { %v327_v53 = vsel %vm326_vm7, %v322_v52, inf }
 0x40d   :  { %328 = vmin.xlane.f32.xlu1 %v327_v53  ;;  %v332_v61 = vshll.u32 %v331_v59, 16 }
 0x411   :  { %489 = vadd.xlane.f32.xlu1 %v488_v55 }
 0x49a   :  { %v329_v60 = vpop.xlane.xlu1 %328 }
 0x49b   :  { %v330_v62 = vcvt.f32.s32 %v329_v60 }
 0x49d   :  { %v333_v63 = vadd.s32 %v332_v61, %v330_v62 }
 0x49e   :  { %v490_v12 = vpop.xlane.xlu1 %489 }
 0x49f   :  { %vm334_vm8 = vcmp.lt.s32.totalorder %v333_v63, 7 }
 0x4a0   :  { %v335_v0 = vsel %vm334_vm8, %v333_v63, 7 }
 0x4a1   :  { %336 = vst [vmem:[%s1004_s13] sm:$0x3] %v335_v0  ;;  %vm337_vm10 = vcmp.eq.s32.totalorder %v947_v36, %v335_v0 }
 0x4a2   :  { %v710_v2 = vsel %vm337_vm10, 1.0, %v785_v1 }
 0x4a3   :  { %750 = vmatmul.mubr.msk.f32.vlgmr.msra.gmra.mrb[2].mxu1 %vm340_vm9, %v710_v2 }
 0x4a4   :  { %761 = vmatpush3.xpose.msk.msra.mxu1 %vm85_vm3, %v486_v56  ;;  %762 = vmatprep.mubr.msk.f32.mxu1 %vm787_vm5, %v785_v1 }
 0x4a5   :  { %765 = vmatprep.subr.mxu1 %v785_v1 }
 0x4a7   :  { %763 = vmatmul.mubr.msk.f32.vlgmr.msra.gmra.mrb[4].mxu1 %vm85_vm3, %v784_v35 }
 0x4a8   :  { %766 = vmatpush3.msra.mxu1 %v486_v56  ;;  %767 = vmatprep.mubr.msk.f32.mxu1 %vm787_vm5, %v785_v1 }
 0x576   :  { %v410_v3 = vpop.f32.mrb[2].mxu1 }
 0x577   :  { %414 = vst.msk [vmem:[%s1005_s11] sm:$0x3] %vm43_vm2, %v410_v3  ;;  %v751_v6 = vpop.f32.mrb[3].mxu1 }
 0x57a   :  { %v567_v8 = vpop.f32.mrb[4].mxu1 }
 0x57b   :  { %v571_v9 = vmul.f32 2.0, %v567_v8  ;;  %v764_v10 = vpop.f32.mrb[5].mxu1 }
 0x57d   :  { %v572_v13 = vsub.f32 %v490_v12, %v571_v9 }
 0x57f   :  { %v579_v14 = vadd.f32 %v577_v11, %v572_v13 }
 0x581   :  { %v580_v15 = vsel %vm50_vm0, %v579_v14, inf }
 0x582   :  { %581 = vmin.xlane.f32.xlu1 %v580_v15 }
 0x60f   :  { %v582_v16 = vpop.xlane.xlu1 %581 }
 0x610   :  { %vm583_vm11 = vcmp.le.f32.partialorder %v579_v14, %v582_v16 }
 0x611   :  { %v584_v17 = vsel %vm583_vm11, %v947_v36, 8 }
 0x612   :  { %v585_v18 = vsel %vm50_vm0, %v584_v17, 2147483647 }
 0x613   :  { %v587_v19 = vshra.s32 %v585_v18, 16  ;;  %v586_v21 = vand.u32 65535, %v585_v18 }
 0x615   :  { %v589_v20 = vcvt.s32.f32 %v587_v19  ;;  %v588_v23 = vcvt.s32.f32 %v586_v21 }
 0x617   :  { %590 = vmin.xlane.f32.xlu0 %v589_v20 }
 0x6a4   :  { %v591_v22 = vpop.xlane.xlu0 %590 }
 0x6a5   :  { %vm592_vm12 = vcmp.eq.f32.partialorder %v589_v20, %v591_v22  ;;  %v597_v25 = vcvt.f32.s32 %v591_v22 }
 0x6a6   :  { %v593_v24 = vsel %vm592_vm12, %v588_v23, inf }
 0x6a7   :  { %594 = vmin.xlane.f32.xlu1 %v593_v24  ;;  %v598_v27 = vshll.u32 %v597_v25, 16 }
 0x734   :  { %v595_v26 = vpop.xlane.xlu1 %594 }
 0x735   :  { %v596_v28 = vcvt.f32.s32 %v595_v26 }
 0x737   :  { %v599_v29 = vadd.s32 %v598_v27, %v596_v28 }
 0x739   :  { %vm600_vm13 = vcmp.lt.s32.totalorder %v599_v29, 7 }
 0x73a   :  { %v601_v30 = vsel %vm600_vm13, %v599_v29, 7 }
 0x73b   :  { %602 = vst [vmem:[%s1006_s14] sm:$0x3] %v601_v30  ;;  %vm603_vm14 = vcmp.eq.s32.totalorder %v947_v36, %v601_v30 }
 0x73c   :  { %v718_v31 = vsel %vm603_vm14, 1.0, %v785_v1 }
 0x73d   :  { %768 = vmatmul.mubr.msk.f32.vlgmr.msra.gmra.mrb[6].mxu1 %vm340_vm9, %v718_v31 }
 0x810   :  { %v675_v32 = vpop.f32.mrb[6].mxu1 }
 0x811   :  { %679 = vst.msk [vmem:[%s1007_s12] sm:$0x3] %vm43_vm2, %v675_v32  ;;  %v769_v33 = vpop.f32.mrb[7].mxu1 }

</bundles_post_ra>
